<compile_context>
chip_gen: v5e
topology: v5e:2x2
jax: 0.10.0
libtpu: 0.0.40
codegen_flags: <defaults>
</compile_context>

<pallas_src>
import jax
import jax.numpy as jnp
from jax.experimental import pallas as pl
from jax.experimental.pallas import tpu as pltpu


# ----------------------------------------------------------------------------- kernel
def gru_fc_kernel(x_ref,      # [Tc, Bb, D]   f32  (cast to bf16 in-kernel for the MXU)
                  w_ih_ref,   # [D,  3*HP]    bf16, panels [r | z | n], each HP lanes
                  w_hh_ref,   # [HP, 3*HP]    bf16
                  b_i_ref,    # [1,  3*HP]    f32  (= b_ir+b_hr | b_iz+b_hz | b_in)
                  b_hn_ref,   # [1,  HP]      f32
                  w_fc_ref,   # [HP, O]       bf16
                  b_fc_ref,   # [1,  O]       f32
                  out_ref,    # [Bb, O]       f32
                  h_ref,      # scratch [Bb, HP]        f32 (carried across time chunks)
                  gx_ref):    # scratch [Tc, Bb, 3*HP]  f32
    t_chunk = pl.program_id(1)
    n_chunks = pl.num_programs(1)
    Tc, Bb, D = x_ref.shape
    HP = w_hh_ref.shape[0]

    @pl.when(t_chunk == 0)
    def _init():
        h_ref[...] = jnp.zeros_like(h_ref)          # h0 = zeros (layerNum == 1)

    # ---- hoisted input projection for the whole chunk: one MXU pass -----------
    # (Tc, Bb, D) -> (Tc*Bb, D) is layout-preserving because Bb % 8 == 0.
    x_flat = x_ref[...].reshape(Tc * Bb, D).astype(jnp.bfloat16)
    gx = (jnp.dot(x_flat, w_ih_ref[...], preferred_element_type=jnp.float32)
          + b_i_ref[...])
    gx_ref[...] = gx.reshape(Tc, Bb, 3 * HP)        # time-major scratch

    w_hh = w_hh_ref[...]                                  # bf16, resident for the loop
    b_hn = jnp.broadcast_to(b_hn_ref[...], (Bb, HP))      # one-time broadcast

    # ---- serial recurrence over this chunk -------------------------------------
    # TODO(synk): keep W_hh resident in MXU weight-staging registers across the loop
    # (pltpu.matmul_push_rhs / matmul_acc_lhs / matmul_pop) to drop the per-step RHS push.
    def step(t, h):
        gx_t = gx_ref[t]                                               # [Bb, 3*HP] dense load
        gh = jnp.dot(h.astype(jnp.bfloat16), w_hh,
                     preferred_element_type=jnp.float32)               # [Bb, 3*HP]
        r = jax.nn.sigmoid(gx_t[:, 0 * HP:1 * HP] + gh[:, 0 * HP:1 * HP])
        z = jax.nn.sigmoid(gx_t[:, 1 * HP:2 * HP] + gh[:, 1 * HP:2 * HP])
        n = jnp.tanh(gx_t[:, 2 * HP:3 * HP] + r * (gh[:, 2 * HP:3 * HP] + b_hn))
        return (1.0 - z) * n + z * h                                   # PyTorch GRU update

    h = jax.lax.fori_loop(0, Tc, step, h_ref[...], unroll=min(Tc, 8))
    h_ref[...] = h

    # ---- fc(h_T) epilogue on the last time chunk --------------------------------
    @pl.when(t_chunk == n_chunks - 1)
    def _fc():
        out_ref[...] = (jnp.dot(h.astype(jnp.bfloat16), w_fc_ref[...],
                                preferred_element_type=jnp.float32) + b_fc_ref[...])


# ----------------------------------------------------------------------------- wrapper
def _round_up(n, m):
    return ((n + m - 1) // m) * m


def _pick_tile(n, target, step=1):
    """Largest multiple-of-`step` divisor of n that is <= target (n itself if n <= target)."""
    if n <= target:
        return n
    best = None
    d = step
    while d <= target:
        if n % d == 0:
            best = d
        d += step
    return best if best is not None else n


def gru_model_forward(x, params, *, t_chunk_target=128, b_tile_target=128):
    """x: [B, T, D] float32 (batch_first, like the PyTorch module). Returns [B, outputDim] f32."""
    B, T, D = x.shape
    HP = params["w_hh"].shape[0]
    O = params["w_fc"].shape[1]

    # Pad batch to full sublane groups and go time-major so per-chunk / per-step
    # slices inside the kernel are dense leading-axis reads.
    Bp = _round_up(max(B, 8), 8)
    if Bp != B:
        x = jnp.pad(x, ((0, Bp - B), (0, 0), (0, 0)))
    x_tm = jnp.transpose(x, (1, 0, 2))             # [T, Bp, D]

    Tc = _pick_tile(T, t_chunk_target)             # time chunk (divides T)
    Bb = _pick_tile(Bp, b_tile_target, step=8)     # batch tile (multiple of 8)
    nb, nt = Bp // Bb, T // Tc

    # rough resident-VMEM estimate -> only raise the scoped limit if we need to
    est = (2 * Tc * Bb * D * 4                               # double-buffered x chunk
           + 2 * (D + HP) * 3 * HP * 2 + 2 * HP * O * 2      # bf16 weights
           + 2 * (3 * HP + HP + O) * 4                       # biases
           + Tc * Bb * 3 * HP * 4 + Bb * HP * 4              # gx + h scratch
           + 2 * Bb * O * 4)                                 # output block
    vmem_limit = int(min(2 * est, 64 * 1024 * 1024)) if 2 * est > (16 << 20) else None

    const2d = lambda i, t: (0, 0)
    out = pl.pallas_call(
        gru_fc_kernel,
        out_shape=jax.ShapeDtypeStruct((Bp, O), jnp.float32),
        grid=(nb, nt),
        in_specs=[
            pl.BlockSpec((Tc, Bb, D), lambda i, t: (t, i, 0)),   # streamed time chunks
            pl.BlockSpec(params["w_ih"].shape, const2d),
            pl.BlockSpec(params["w_hh"].shape, const2d),
            pl.BlockSpec(params["b_i"].shape, const2d),
            pl.BlockSpec(params["b_hn"].shape, const2d),
            pl.BlockSpec(params["w_fc"].shape, const2d),
            pl.BlockSpec(params["b_fc"].shape, const2d),
        ],
        out_specs=pl.BlockSpec((Bb, O), lambda i, t: (i, 0)),    # resident across t
        scratch_shapes=[
            pltpu.VMEM((Bb, HP), jnp.float32),                   # h carry
            pltpu.VMEM((Tc, Bb, 3 * HP), jnp.float32),           # time-major gx
        ],
        compiler_params=pltpu.CompilerParams(
            dimension_semantics=("parallel", "arbitrary"),
            vmem_limit_bytes=vmem_limit,
        ),
    )(x_tm, params["w_ih"], params["w_hh"], params["b_i"],
      params["b_hn"], params["w_fc"], params["b_fc"])
    return out[:B]


# ----------------------------------------------------------------------------- params
def init_torch_params(key, input_dim, hidden, output_dim):
    """Parameters with PyTorch shapes/init (nn.GRU layer 0 + nn.Linear)."""
    ks = jax.random.split(key, 6)
    s = 1.0 / jnp.sqrt(hidden)

    def u(k, shape):
        return jax.random.uniform(k, shape, jnp.float32, -s, s)

    return {
        "weight_ih_l0": u(ks[0], (3 * hidden, input_dim)),   # rows: [r | z | n]
        "weight_hh_l0": u(ks[1], (3 * hidden, hidden)),
        "bias_ih_l0":   u(ks[2], (3 * hidden,)),
        "bias_hh_l0":   u(ks[3], (3 * hidden,)),
        "fc_weight":    u(ks[4], (output_dim, hidden)),
        "fc_bias":      u(ks[5], (output_dim,)),
    }


def pack_params(raw, lane=128):
    """Fuse + transpose + 128-lane-align the PyTorch params for the kernel.

    Each gate (r, z, n) gets its own HP = roundup(H, 128)-wide zero-padded panel so
    in-kernel gate slices fall on lane boundaries.  b_hr/b_hz are folded into the
    input-projection bias; b_hn stays separate (it sits inside the r * (...) term).
    Zero padding keeps the padded columns of h exactly 0 through the recurrence.
    """
    W_ih, W_hh = raw["weight_ih_l0"], raw["weight_hh_l0"]
    b_ih, b_hh = raw["bias_ih_l0"], raw["bias_hh_l0"]
    W_fc, b_fc = raw["fc_weight"], raw["fc_bias"]
    H = W_hh.shape[1]
    D = W_ih.shape[1]
    O = W_fc.shape[0]
    HP = _round_up(H, lane)

    w_ih = jnp.zeros((D, 3 * HP), jnp.float32)
    w_hh = jnp.zeros((HP, 3 * HP), jnp.float32)
    b_i = jnp.zeros((1, 3 * HP), jnp.float32)
    for g in range(3):                                # 0:r  1:z  2:n  (PyTorch order)
        w_ih = w_ih.at[:, g * HP:g * HP + H].set(W_ih[g * H:(g + 1) * H, :].T)
        w_hh = w_hh.at[:H, g * HP:g * HP + H].set(W_hh[g * H:(g + 1) * H, :].T)
        bg = b_ih[g * H:(g + 1) * H]
        if g < 2:
            bg = bg + b_hh[g * H:(g + 1) * H]
        b_i = b_i.at[0, g * HP:g * HP + H].set(bg)
    b_hn = jnp.zeros((1, HP), jnp.float32).at[0, :H].set(b_hh[2 * H:3 * H])
    w_fc = jnp.zeros((HP, O), jnp.float32).at[:H, :].set(W_fc.T)

    return {
        "w_ih": w_ih.astype(jnp.bfloat16),            # MXU operands pre-cast to bf16
        "w_hh": w_hh.astype(jnp.bfloat16),
        "w_fc": w_fc.astype(jnp.bfloat16),
        "b_i": b_i,
        "b_hn": b_hn,
        "b_fc": b_fc.reshape(1, O),
    }


# ----------------------------------------------------------------------------- reference
def gru_model_reference(x, raw):
    """Pure-JAX f32 reference of torch.nn.GRU(batch_first) + nn.Linear (exact gate math)."""
    W_ih, W_hh = raw["weight_ih_l0"], raw["weight_hh_l0"]
    b_ih, b_hh = raw["bias_ih_l0"], raw["bias_hh_l0"]
    H = W_hh.shape[1]
    B, T, _ = x.shape
    h = jnp.zeros((B, H), jnp.float32)
    for t in range(T):
        gi = x[:, t, :] @ W_ih.T + b_ih
        gh = h @ W_hh.T + b_hh
        r = jax.nn.sigmoid(gi[:, :H] + gh[:, :H])
        z = jax.nn.sigmoid(gi[:, H:2 * H] + gh[:, H:2 * H])
        n = jnp.tanh(gi[:, 2 * H:] + r * gh[:, 2 * H:])
        h = (1.0 - z) * n + z * h
    return h @ raw["fc_weight"].T + raw["fc_bias"]


if __name__ == "__main__":
    # GRUModel(inputDim=4, hiddenNum=32, outputDim=4, layerNum=1, cell='GRU')
    B, T, D, H, O = 2, 8, 4, 32, 4

    key = jax.random.PRNGKey(0)
    k_x, k_p = jax.random.split(key)
    x = jax.random.normal(k_x, (B, T, D), jnp.float32)
    raw = init_torch_params(k_p, D, H, O)
    params = pack_params(raw)

    out = gru_model_forward(x, params)
    out = jax.block_until_ready(out)

    ref = gru_model_reference(x, raw)
    assert out.shape == (B, O)
    # bf16 MXU operands with f32 accumulation -> loose tolerance vs. the exact f32 reference.
    err = jnp.max(jnp.abs(out - ref))
    assert jnp.allclose(out, ref, atol=5e-2, rtol=5e-2), f"mismatch vs reference, max abs err {err}"

    print("KERNEL_OK")
</pallas_src>

<mosaic_0001>
module attributes {stable_mosaic.version = 11 : i64} {
  func.func @gru_fc_kernel(%arg0: i32, %arg1: i32, %arg2: memref<8x8x4xf32, #tpu.memory_space<vmem>>, %arg3: memref<4x384xbf16, #tpu.memory_space<vmem>>, %arg4: memref<128x384xbf16, #tpu.memory_space<vmem>>, %arg5: memref<1x384xf32, #tpu.memory_space<vmem>>, %arg6: memref<1x128xf32, #tpu.memory_space<vmem>>, %arg7: memref<128x4xbf16, #tpu.memory_space<vmem>>, %arg8: memref<1x4xf32, #tpu.memory_space<vmem>>, %arg9: memref<8x4xf32, #tpu.memory_space<vmem>>, %arg10: memref<8x128xf32, #tpu.memory_space<vmem>>, %arg11: memref<8x8x384xf32, #tpu.memory_space<vmem>>) attributes {dimension_semantics = [#tpu.dimension_semantics<parallel>, #tpu.dimension_semantics<arbitrary>], iteration_bounds = array<i64: 1, 1>, scalar_prefetch = 0 : i64, scratch_operands = 2 : i64, tpu.core_type = #tpu.core_type<tc>, window_params = [{transform_indices = @transform_0, window_bounds = array<i64: 8, 8, 4>}, {pipeline_mode = #tpu.pipeline_mode<synchronous>, transform_indices = @transform_1, window_bounds = array<i64: 4, 384>}, {pipeline_mode = #tpu.pipeline_mode<synchronous>, transform_indices = @transform_2, window_bounds = array<i64: 128, 384>}, {pipeline_mode = #tpu.pipeline_mode<synchronous>, transform_indices = @transform_3, window_bounds = array<i64: 1, 384>}, {pipeline_mode = #tpu.pipeline_mode<synchronous>, transform_indices = @transform_4, window_bounds = array<i64: 1, 128>}, {pipeline_mode = #tpu.pipeline_mode<synchronous>, transform_indices = @transform_5, window_bounds = array<i64: 128, 4>}, {pipeline_mode = #tpu.pipeline_mode<synchronous>, transform_indices = @transform_6, window_bounds = array<i64: 1, 4>}, {transform_indices = @transform_7, window_bounds = array<i64: 8, 4>}]} {
    %c0_i32 = arith.constant 0 : i32
    %0 = arith.cmpi eq, %arg1, %c0_i32 : i32
    %1 = arith.extui %0 : i1 to i32
    %c0_i32_0 = arith.constant 0 : i32
    %2 = arith.cmpi ne, %1, %c0_i32_0 : i32
    scf.if %2 {
      %cst_69 = arith.constant 0.000000e+00 : f32
      %278 = vector.broadcast %cst_69 : f32 to vector<8x128xf32>
      %c0_70 = arith.constant 0 : index
      %c0_71 = arith.constant 0 : index
      %279 = vector.load %arg10[%c0_70, %c0_71] : memref<8x128xf32, #tpu.memory_space<vmem>>, vector<8x128xf32>
      tpu.vector_store %arg10[%c0_70, %c0_71], %278 {strides = array<i32>} : memref<8x128xf32, #tpu.memory_space<vmem>>, vector<8x128xf32>,
    } else {
    }
    %c0 = arith.constant 0 : index
    %c0_1 = arith.constant 0 : index
    %c0_2 = arith.constant 0 : index
    %3 = vector.load %arg2[%c0, %c0_1, %c0_2] : memref<8x8x4xf32, #tpu.memory_space<vmem>>, vector<8x8x4xf32>
    %4 = vector.shape_cast %3 : vector<8x8x4xf32> to vector<64x4xf32>
    %5 = arith.truncf %4 : vector<64x4xf32> to vector<64x4xbf16>
    %c0_3 = arith.constant 0 : index
    %c0_4 = arith.constant 0 : index
    %6 = vector.load %arg3[%c0_3, %c0_4] : memref<4x384xbf16, #tpu.memory_space<vmem>>, vector<4x384xbf16>
    %cst = arith.constant dense<0.000000e+00> : vector<64x384xf32>
    %7 = tpu.matmul %5, %6, %cst {dimension_numbers = #tpu.dot_dimension_numbers<[1], [0], [0], [1], [0, 0, 1, 1], [], []>} : vector<64x4xbf16>, vector<4x384xbf16>, vector<64x384xf32> -> vector<64x384xf32>
    %c0_5 = arith.constant 0 : index
    %c0_6 = arith.constant 0 : index
    %8 = vector.load %arg5[%c0_5, %c0_6] : memref<1x384xf32, #tpu.memory_space<vmem>>, vector<1x384xf32>
    %9 = vector.broadcast %8 : vector<1x384xf32> to vector<64x384xf32>
    %10 = arith.addf %7, %9 : vector<64x384xf32>
    %11 = vector.shape_cast %10 : vector<64x384xf32> to vector<8x8x384xf32>
    %c0_7 = arith.constant 0 : index
    %c0_8 = arith.constant 0 : index
    %c0_9 = arith.constant 0 : index
    %12 = vector.load %arg11[%c0_7, %c0_8, %c0_9] : memref<8x8x384xf32, #tpu.memory_space<vmem>>, vector<8x8x384xf32>
    tpu.vector_store %arg11[%c0_7, %c0_8, %c0_9], %11 {strides = array<i32>} : memref<8x8x384xf32, #tpu.memory_space<vmem>>, vector<8x8x384xf32>,
    %c0_10 = arith.constant 0 : index
    %c0_11 = arith.constant 0 : index
    %13 = vector.load %arg4[%c0_10, %c0_11] : memref<128x384xbf16, #tpu.memory_space<vmem>>, vector<128x384xbf16>
    %c0_12 = arith.constant 0 : index
    %c0_13 = arith.constant 0 : index
    %14 = vector.load %arg6[%c0_12, %c0_13] : memref<1x128xf32, #tpu.memory_space<vmem>>, vector<1x128xf32>
    %15 = vector.shape_cast %14 : vector<1x128xf32> to vector<1x128xf32>
    %16 = vector.broadcast %15 : vector<1x128xf32> to vector<8x128xf32>
    %c0_14 = arith.constant 0 : index
    %c0_15 = arith.constant 0 : index
    %17 = vector.load %arg10[%c0_14, %c0_15] : memref<8x128xf32, #tpu.memory_space<vmem>>, vector<8x128xf32>
    %c0_i32_16 = arith.constant 0 : i32
    %18 = arith.index_cast %c0_i32_16 : i32 to index
    %c0_17 = arith.constant 0 : index
    %c0_18 = arith.constant 0 : index
    %19 = vector.load %arg11[%18, %c0_17, %c0_18] : memref<8x8x384xf32, #tpu.memory_space<vmem>>, vector<1x8x384xf32>
    %20 = vector.shape_cast %19 : vector<1x8x384xf32> to vector<8x384xf32>
    %21 = arith.truncf %17 : vector<8x128xf32> to vector<8x128xbf16>
    %cst_19 = arith.constant dense<0.000000e+00> : vector<8x384xf32>
    %22 = tpu.matmul %21, %13, %cst_19 {dimension_numbers = #tpu.dot_dimension_numbers<[1], [0], [0], [1], [0, 0, 1, 1], [], []>} : vector<8x128xbf16>, vector<128x384xbf16>, vector<8x384xf32> -> vector<8x384xf32>
    %23 = vector.extract_strided_slice %20 {offsets = [0, 0], sizes = [8, 128], strides = [1, 1]} : vector<8x384xf32> to vector<8x128xf32>
    %24 = vector.extract_strided_slice %22 {offsets = [0, 0], sizes = [8, 128], strides = [1, 1]} : vector<8x384xf32> to vector<8x128xf32>
    %25 = arith.addf %23, %24 : vector<8x128xf32>
    %26 = arith.negf %25 : vector<8x128xf32>
    %27 = math.exp %26 : vector<8x128xf32>
    %cst_20 = arith.constant 1.000000e+00 : f32
    %28 = vector.broadcast %cst_20 : f32 to vector<8x128xf32>
    %29 = arith.addf %28, %27 : vector<8x128xf32>
    %30 = arith.divf %28, %29 : vector<8x128xf32>
    %31 = vector.extract_strided_slice %20 {offsets = [0, 128], sizes = [8, 128], strides = [1, 1]} : vector<8x384xf32> to vector<8x128xf32>
    %32 = vector.extract_strided_slice %22 {offsets = [0, 128], sizes = [8, 128], strides = [1, 1]} : vector<8x384xf32> to vector<8x128xf32>
    %33 = arith.addf %31, %32 : vector<8x128xf32>
    %34 = arith.negf %33 : vector<8x128xf32>
    %35 = math.exp %34 : vector<8x128xf32>
    %cst_21 = arith.constant 1.000000e+00 : f32
    %36 = vector.broadcast %cst_21 : f32 to vector<8x128xf32>
    %37 = arith.addf %36, %35 : vector<8x128xf32>
    %38 = arith.divf %36, %37 : vector<8x128xf32>
    %39 = vector.extract_strided_slice %20 {offsets = [0, 256], sizes = [8, 128], strides = [1, 1]} : vector<8x384xf32> to vector<8x128xf32>
    %40 = vector.extract_strided_slice %22 {offsets = [0, 256], sizes = [8, 128], strides = [1, 1]} : vector<8x384xf32> to vector<8x128xf32>
    %41 = arith.addf %40, %16 : vector<8x128xf32>
    %42 = arith.mulf %30, %41 : vector<8x128xf32>
    %43 = arith.addf %39, %42 : vector<8x128xf32>
    %44 = math.tanh %43 : vector<8x128xf32>
    %cst_22 = arith.constant 1.000000e+00 : f32
    %45 = vector.broadcast %cst_22 : f32 to vector<8x128xf32>
    %46 = arith.subf %45, %38 : vector<8x128xf32>
    %47 = arith.mulf %46, %44 : vector<8x128xf32>
    %48 = arith.mulf %38, %17 : vector<8x128xf32>
    %49 = arith.addf %47, %48 : vector<8x128xf32>
    %c1_i32 = arith.constant 1 : i32
    %50 = arith.index_cast %c1_i32 : i32 to index
    %c0_23 = arith.constant 0 : index
    %c0_24 = arith.constant 0 : index
    %51 = vector.load %arg11[%50, %c0_23, %c0_24] : memref<8x8x384xf32, #tpu.memory_space<vmem>>, vector<1x8x384xf32>
    %52 = vector.shape_cast %51 : vector<1x8x384xf32> to vector<8x384xf32>
    %53 = arith.truncf %49 : vector<8x128xf32> to vector<8x128xbf16>
    %cst_25 = arith.constant dense<0.000000e+00> : vector<8x384xf32>
    %54 = tpu.matmul %53, %13, %cst_25 {dimension_numbers = #tpu.dot_dimension_numbers<[1], [0], [0], [1], [0, 0, 1, 1], [], []>} : vector<8x128xbf16>, vector<128x384xbf16>, vector<8x384xf32> -> vector<8x384xf32>
    %55 = vector.extract_strided_slice %52 {offsets = [0, 0], sizes = [8, 128], strides = [1, 1]} : vector<8x384xf32> to vector<8x128xf32>
    %56 = vector.extract_strided_slice %54 {offsets = [0, 0], sizes = [8, 128], strides = [1, 1]} : vector<8x384xf32> to vector<8x128xf32>
    %57 = arith.addf %55, %56 : vector<8x128xf32>
    %58 = arith.negf %57 : vector<8x128xf32>
    %59 = math.exp %58 : vector<8x128xf32>
    %cst_26 = arith.constant 1.000000e+00 : f32
    %60 = vector.broadcast %cst_26 : f32 to vector<8x128xf32>
    %61 = arith.addf %60, %59 : vector<8x128xf32>
    %62 = arith.divf %60, %61 : vector<8x128xf32>
    %63 = vector.extract_strided_slice %52 {offsets = [0, 128], sizes = [8, 128], strides = [1, 1]} : vector<8x384xf32> to vector<8x128xf32>
    %64 = vector.extract_strided_slice %54 {offsets = [0, 128], sizes = [8, 128], strides = [1, 1]} : vector<8x384xf32> to vector<8x128xf32>
    %65 = arith.addf %63, %64 : vector<8x128xf32>
    %66 = arith.negf %65 : vector<8x128xf32>
    %67 = math.exp %66 : vector<8x128xf32>
    %cst_27 = arith.constant 1.000000e+00 : f32
    %68 = vector.broadcast %cst_27 : f32 to vector<8x128xf32>
    %69 = arith.addf %68, %67 : vector<8x128xf32>
    %70 = arith.divf %68, %69 : vector<8x128xf32>
    %71 = vector.extract_strided_slice %52 {offsets = [0, 256], sizes = [8, 128], strides = [1, 1]} : vector<8x384xf32> to vector<8x128xf32>
    %72 = vector.extract_strided_slice %54 {offsets = [0, 256], sizes = [8, 128], strides = [1, 1]} : vector<8x384xf32> to vector<8x128xf32>
    %73 = arith.addf %72, %16 : vector<8x128xf32>
    %74 = arith.mulf %62, %73 : vector<8x128xf32>
    %75 = arith.addf %71, %74 : vector<8x128xf32>
    %76 = math.tanh %75 : vector<8x128xf32>
    %cst_28 = arith.constant 1.000000e+00 : f32
    %77 = vector.broadcast %cst_28 : f32 to vector<8x128xf32>
    %78 = arith.subf %77, %70 : vector<8x128xf32>
    %79 = arith.mulf %78, %76 : vector<8x128xf32>
    %80 = arith.mulf %70, %49 : vector<8x128xf32>
    %81 = arith.addf %79, %80 : vector<8x128xf32>
    %c2_i32 = arith.constant 2 : i32
    %82 = arith.index_cast %c2_i32 : i32 to index
    %c0_29 = arith.constant 0 : index
    %c0_30 = arith.constant 0 : index
    %83 = vector.load %arg11[%82, %c0_29, %c0_30] : memref<8x8x384xf32, #tpu.memory_space<vmem>>, vector<1x8x384xf32>
    %84 = vector.shape_cast %83 : vector<1x8x384xf32> to vector<8x384xf32>
    %85 = arith.truncf %81 : vector<8x128xf32> to vector<8x128xbf16>
    %cst_31 = arith.constant dense<0.000000e+00> : vector<8x384xf32>
    %86 = tpu.matmul %85, %13, %cst_31 {dimension_numbers = #tpu.dot_dimension_numbers<[1], [0], [0], [1], [0, 0, 1, 1], [], []>} : vector<8x128xbf16>, vector<128x384xbf16>, vector<8x384xf32> -> vector<8x384xf32>
    %87 = vector.extract_strided_slice %84 {offsets = [0, 0], sizes = [8, 128], strides = [1, 1]} : vector<8x384xf32> to vector<8x128xf32>
    %88 = vector.extract_strided_slice %86 {offsets = [0, 0], sizes = [8, 128], strides = [1, 1]} : vector<8x384xf32> to vector<8x128xf32>
    %89 = arith.addf %87, %88 : vector<8x128xf32>
    %90 = arith.negf %89 : vector<8x128xf32>
    %91 = math.exp %90 : vector<8x128xf32>
    %cst_32 = arith.constant 1.000000e+00 : f32
    %92 = vector.broadcast %cst_32 : f32 to vector<8x128xf32>
    %93 = arith.addf %92, %91 : vector<8x128xf32>
    %94 = arith.divf %92, %93 : vector<8x128xf32>
    %95 = vector.extract_strided_slice %84 {offsets = [0, 128], sizes = [8, 128], strides = [1, 1]} : vector<8x384xf32> to vector<8x128xf32>
    %96 = vector.extract_strided_slice %86 {offsets = [0, 128], sizes = [8, 128], strides = [1, 1]} : vector<8x384xf32> to vector<8x128xf32>
    %97 = arith.addf %95, %96 : vector<8x128xf32>
    %98 = arith.negf %97 : vector<8x128xf32>
    %99 = math.exp %98 : vector<8x128xf32>
    %cst_33 = arith.constant 1.000000e+00 : f32
    %100 = vector.broadcast %cst_33 : f32 to vector<8x128xf32>
    %101 = arith.addf %100, %99 : vector<8x128xf32>
    %102 = arith.divf %100, %101 : vector<8x128xf32>
    %103 = vector.extract_strided_slice %84 {offsets = [0, 256], sizes = [8, 128], strides = [1, 1]} : vector<8x384xf32> to vector<8x128xf32>
    %104 = vector.extract_strided_slice %86 {offsets = [0, 256], sizes = [8, 128], strides = [1, 1]} : vector<8x384xf32> to vector<8x128xf32>
    %105 = arith.addf %104, %16 : vector<8x128xf32>
    %106 = arith.mulf %94, %105 : vector<8x128xf32>
    %107 = arith.addf %103, %106 : vector<8x128xf32>
    %108 = math.tanh %107 : vector<8x128xf32>
    %cst_34 = arith.constant 1.000000e+00 : f32
    %109 = vector.broadcast %cst_34 : f32 to vector<8x128xf32>
    %110 = arith.subf %109, %102 : vector<8x128xf32>
    %111 = arith.mulf %110, %108 : vector<8x128xf32>
    %112 = arith.mulf %102, %81 : vector<8x128xf32>
    %113 = arith.addf %111, %112 : vector<8x128xf32>
    %c3_i32 = arith.constant 3 : i32
    %114 = arith.index_cast %c3_i32 : i32 to index
    %c0_35 = arith.constant 0 : index
    %c0_36 = arith.constant 0 : index
    %115 = vector.load %arg11[%114, %c0_35, %c0_36] : memref<8x8x384xf32, #tpu.memory_space<vmem>>, vector<1x8x384xf32>
    %116 = vector.shape_cast %115 : vector<1x8x384xf32> to vector<8x384xf32>
    %117 = arith.truncf %113 : vector<8x128xf32> to vector<8x128xbf16>
    %cst_37 = arith.constant dense<0.000000e+00> : vector<8x384xf32>
    %118 = tpu.matmul %117, %13, %cst_37 {dimension_numbers = #tpu.dot_dimension_numbers<[1], [0], [0], [1], [0, 0, 1, 1], [], []>} : vector<8x128xbf16>, vector<128x384xbf16>, vector<8x384xf32> -> vector<8x384xf32>
    %119 = vector.extract_strided_slice %116 {offsets = [0, 0], sizes = [8, 128], strides = [1, 1]} : vector<8x384xf32> to vector<8x128xf32>
    %120 = vector.extract_strided_slice %118 {offsets = [0, 0], sizes = [8, 128], strides = [1, 1]} : vector<8x384xf32> to vector<8x128xf32>
    %121 = arith.addf %119, %120 : vector<8x128xf32>
    %122 = arith.negf %121 : vector<8x128xf32>
    %123 = math.exp %122 : vector<8x128xf32>
    %cst_38 = arith.constant 1.000000e+00 : f32
    %124 = vector.broadcast %cst_38 : f32 to vector<8x128xf32>
    %125 = arith.addf %124, %123 : vector<8x128xf32>
    %126 = arith.divf %124, %125 : vector<8x128xf32>
    %127 = vector.extract_strided_slice %116 {offsets = [0, 128], sizes = [8, 128], strides = [1, 1]} : vector<8x384xf32> to vector<8x128xf32>
    %128 = vector.extract_strided_slice %118 {offsets = [0, 128], sizes = [8, 128], strides = [1, 1]} : vector<8x384xf32> to vector<8x128xf32>
    %129 = arith.addf %127, %128 : vector<8x128xf32>
    %130 = arith.negf %129 : vector<8x128xf32>
    %131 = math.exp %130 : vector<8x128xf32>
    %cst_39 = arith.constant 1.000000e+00 : f32
    %132 = vector.broadcast %cst_39 : f32 to vector<8x128xf32>
    %133 = arith.addf %132, %131 : vector<8x128xf32>
    %134 = arith.divf %132, %133 : vector<8x128xf32>
    %135 = vector.extract_strided_slice %116 {offsets = [0, 256], sizes = [8, 128], strides = [1, 1]} : vector<8x384xf32> to vector<8x128xf32>
    %136 = vector.extract_strided_slice %118 {offsets = [0, 256], sizes = [8, 128], strides = [1, 1]} : vector<8x384xf32> to vector<8x128xf32>
    %137 = arith.addf %136, %16 : vector<8x128xf32>
    %138 = arith.mulf %126, %137 : vector<8x128xf32>
    %139 = arith.addf %135, %138 : vector<8x128xf32>
    %140 = math.tanh %139 : vector<8x128xf32>
    %cst_40 = arith.constant 1.000000e+00 : f32
    %141 = vector.broadcast %cst_40 : f32 to vector<8x128xf32>
    %142 = arith.subf %141, %134 : vector<8x128xf32>
    %143 = arith.mulf %142, %140 : vector<8x128xf32>
    %144 = arith.mulf %134, %113 : vector<8x128xf32>
    %145 = arith.addf %143, %144 : vector<8x128xf32>
    %c4_i32 = arith.constant 4 : i32
    %146 = arith.index_cast %c4_i32 : i32 to index
    %c0_41 = arith.constant 0 : index
    %c0_42 = arith.constant 0 : index
    %147 = vector.load %arg11[%146, %c0_41, %c0_42] : memref<8x8x384xf32, #tpu.memory_space<vmem>>, vector<1x8x384xf32>
    %148 = vector.shape_cast %147 : vector<1x8x384xf32> to vector<8x384xf32>
    %149 = arith.truncf %145 : vector<8x128xf32> to vector<8x128xbf16>
    %cst_43 = arith.constant dense<0.000000e+00> : vector<8x384xf32>
    %150 = tpu.matmul %149, %13, %cst_43 {dimension_numbers = #tpu.dot_dimension_numbers<[1], [0], [0], [1], [0, 0, 1, 1], [], []>} : vector<8x128xbf16>, vector<128x384xbf16>, vector<8x384xf32> -> vector<8x384xf32>
    %151 = vector.extract_strided_slice %148 {offsets = [0, 0], sizes = [8, 128], strides = [1, 1]} : vector<8x384xf32> to vector<8x128xf32>
    %152 = vector.extract_strided_slice %150 {offsets = [0, 0], sizes = [8, 128], strides = [1, 1]} : vector<8x384xf32> to vector<8x128xf32>
    %153 = arith.addf %151, %152 : vector<8x128xf32>
    %154 = arith.negf %153 : vector<8x128xf32>
    %155 = math.exp %154 : vector<8x128xf32>
    %cst_44 = arith.constant 1.000000e+00 : f32
    %156 = vector.broadcast %cst_44 : f32 to vector<8x128xf32>
    %157 = arith.addf %156, %155 : vector<8x128xf32>
    %158 = arith.divf %156, %157 : vector<8x128xf32>
    %159 = vector.extract_strided_slice %148 {offsets = [0, 128], sizes = [8, 128], strides = [1, 1]} : vector<8x384xf32> to vector<8x128xf32>
    %160 = vector.extract_strided_slice %150 {offsets = [0, 128], sizes = [8, 128], strides = [1, 1]} : vector<8x384xf32> to vector<8x128xf32>
    %161 = arith.addf %159, %160 : vector<8x128xf32>
    %162 = arith.negf %161 : vector<8x128xf32>
    %163 = math.exp %162 : vector<8x128xf32>
    %cst_45 = arith.constant 1.000000e+00 : f32
    %164 = vector.broadcast %cst_45 : f32 to vector<8x128xf32>
    %165 = arith.addf %164, %163 : vector<8x128xf32>
    %166 = arith.divf %164, %165 : vector<8x128xf32>
    %167 = vector.extract_strided_slice %148 {offsets = [0, 256], sizes = [8, 128], strides = [1, 1]} : vector<8x384xf32> to vector<8x128xf32>
    %168 = vector.extract_strided_slice %150 {offsets = [0, 256], sizes = [8, 128], strides = [1, 1]} : vector<8x384xf32> to vector<8x128xf32>
    %169 = arith.addf %168, %16 : vector<8x128xf32>
    %170 = arith.mulf %158, %169 : vector<8x128xf32>
    %171 = arith.addf %167, %170 : vector<8x128xf32>
    %172 = math.tanh %171 : vector<8x128xf32>
    %cst_46 = arith.constant 1.000000e+00 : f32
    %173 = vector.broadcast %cst_46 : f32 to vector<8x128xf32>
    %174 = arith.subf %173, %166 : vector<8x128xf32>
    %175 = arith.mulf %174, %172 : vector<8x128xf32>
    %176 = arith.mulf %166, %145 : vector<8x128xf32>
    %177 = arith.addf %175, %176 : vector<8x128xf32>
    %c5_i32 = arith.constant 5 : i32
    %178 = arith.index_cast %c5_i32 : i32 to index
    %c0_47 = arith.constant 0 : index
    %c0_48 = arith.constant 0 : index
    %179 = vector.load %arg11[%178, %c0_47, %c0_48] : memref<8x8x384xf32, #tpu.memory_space<vmem>>, vector<1x8x384xf32>
    %180 = vector.shape_cast %179 : vector<1x8x384xf32> to vector<8x384xf32>
    %181 = arith.truncf %177 : vector<8x128xf32> to vector<8x128xbf16>
    %cst_49 = arith.constant dense<0.000000e+00> : vector<8x384xf32>
    %182 = tpu.matmul %181, %13, %cst_49 {dimension_numbers = #tpu.dot_dimension_numbers<[1], [0], [0], [1], [0, 0, 1, 1], [], []>} : vector<8x128xbf16>, vector<128x384xbf16>, vector<8x384xf32> -> vector<8x384xf32>
    %183 = vector.extract_strided_slice %180 {offsets = [0, 0], sizes = [8, 128], strides = [1, 1]} : vector<8x384xf32> to vector<8x128xf32>
    %184 = vector.extract_strided_slice %182 {offsets = [0, 0], sizes = [8, 128], strides = [1, 1]} : vector<8x384xf32> to vector<8x128xf32>
    %185 = arith.addf %183, %184 : vector<8x128xf32>
    %186 = arith.negf %185 : vector<8x128xf32>
    %187 = math.exp %186 : vector<8x128xf32>
    %cst_50 = arith.constant 1.000000e+00 : f32
    %188 = vector.broadcast %cst_50 : f32 to vector<8x128xf32>
    %189 = arith.addf %188, %187 : vector<8x128xf32>
    %190 = arith.divf %188, %189 : vector<8x128xf32>
    %191 = vector.extract_strided_slice %180 {offsets = [0, 128], sizes = [8, 128], strides = [1, 1]} : vector<8x384xf32> to vector<8x128xf32>
    %192 = vector.extract_strided_slice %182 {offsets = [0, 128], sizes = [8, 128], strides = [1, 1]} : vector<8x384xf32> to vector<8x128xf32>
    %193 = arith.addf %191, %192 : vector<8x128xf32>
    %194 = arith.negf %193 : vector<8x128xf32>
    %195 = math.exp %194 : vector<8x128xf32>
    %cst_51 = arith.constant 1.000000e+00 : f32
    %196 = vector.broadcast %cst_51 : f32 to vector<8x128xf32>
    %197 = arith.addf %196, %195 : vector<8x128xf32>
    %198 = arith.divf %196, %197 : vector<8x128xf32>
    %199 = vector.extract_strided_slice %180 {offsets = [0, 256], sizes = [8, 128], strides = [1, 1]} : vector<8x384xf32> to vector<8x128xf32>
    %200 = vector.extract_strided_slice %182 {offsets = [0, 256], sizes = [8, 128], strides = [1, 1]} : vector<8x384xf32> to vector<8x128xf32>
    %201 = arith.addf %200, %16 : vector<8x128xf32>
    %202 = arith.mulf %190, %201 : vector<8x128xf32>
    %203 = arith.addf %199, %202 : vector<8x128xf32>
    %204 = math.tanh %203 : vector<8x128xf32>
    %cst_52 = arith.constant 1.000000e+00 : f32
    %205 = vector.broadcast %cst_52 : f32 to vector<8x128xf32>
    %206 = arith.subf %205, %198 : vector<8x128xf32>
    %207 = arith.mulf %206, %204 : vector<8x128xf32>
    %208 = arith.mulf %198, %177 : vector<8x128xf32>
    %209 = arith.addf %207, %208 : vector<8x128xf32>
    %c6_i32 = arith.constant 6 : i32
    %210 = arith.index_cast %c6_i32 : i32 to index
    %c0_53 = arith.constant 0 : index
    %c0_54 = arith.constant 0 : index
    %211 = vector.load %arg11[%210, %c0_53, %c0_54] : memref<8x8x384xf32, #tpu.memory_space<vmem>>, vector<1x8x384xf32>
    %212 = vector.shape_cast %211 : vector<1x8x384xf32> to vector<8x384xf32>
    %213 = arith.truncf %209 : vector<8x128xf32> to vector<8x128xbf16>
    %cst_55 = arith.constant dense<0.000000e+00> : vector<8x384xf32>
    %214 = tpu.matmul %213, %13, %cst_55 {dimension_numbers = #tpu.dot_dimension_numbers<[1], [0], [0], [1], [0, 0, 1, 1], [], []>} : vector<8x128xbf16>, vector<128x384xbf16>, vector<8x384xf32> -> vector<8x384xf32>
    %215 = vector.extract_strided_slice %212 {offsets = [0, 0], sizes = [8, 128], strides = [1, 1]} : vector<8x384xf32> to vector<8x128xf32>
    %216 = vector.extract_strided_slice %214 {offsets = [0, 0], sizes = [8, 128], strides = [1, 1]} : vector<8x384xf32> to vector<8x128xf32>
    %217 = arith.addf %215, %216 : vector<8x128xf32>
    %218 = arith.negf %217 : vector<8x128xf32>
    %219 = math.exp %218 : vector<8x128xf32>
    %cst_56 = arith.constant 1.000000e+00 : f32
    %220 = vector.broadcast %cst_56 : f32 to vector<8x128xf32>
    %221 = arith.addf %220, %219 : vector<8x128xf32>
    %222 = arith.divf %220, %221 : vector<8x128xf32>
    %223 = vector.extract_strided_slice %212 {offsets = [0, 128], sizes = [8, 128], strides = [1, 1]} : vector<8x384xf32> to vector<8x128xf32>
    %224 = vector.extract_strided_slice %214 {offsets = [0, 128], sizes = [8, 128], strides = [1, 1]} : vector<8x384xf32> to vector<8x128xf32>
    %225 = arith.addf %223, %224 : vector<8x128xf32>
    %226 = arith.negf %225 : vector<8x128xf32>
    %227 = math.exp %226 : vector<8x128xf32>
    %cst_57 = arith.constant 1.000000e+00 : f32
    %228 = vector.broadcast %cst_57 : f32 to vector<8x128xf32>
    %229 = arith.addf %228, %227 : vector<8x128xf32>
    %230 = arith.divf %228, %229 : vector<8x128xf32>
    %231 = vector.extract_strided_slice %212 {offsets = [0, 256], sizes = [8, 128], strides = [1, 1]} : vector<8x384xf32> to vector<8x128xf32>
    %232 = vector.extract_strided_slice %214 {offsets = [0, 256], sizes = [8, 128], strides = [1, 1]} : vector<8x384xf32> to vector<8x128xf32>
    %233 = arith.addf %232, %16 : vector<8x128xf32>
    %234 = arith.mulf %222, %233 : vector<8x128xf32>
    %235 = arith.addf %231, %234 : vector<8x128xf32>
    %236 = math.tanh %235 : vector<8x128xf32>
    %cst_58 = arith.constant 1.000000e+00 : f32
    %237 = vector.broadcast %cst_58 : f32 to vector<8x128xf32>
    %238 = arith.subf %237, %230 : vector<8x128xf32>
    %239 = arith.mulf %238, %236 : vector<8x128xf32>
    %240 = arith.mulf %230, %209 : vector<8x128xf32>
    %241 = arith.addf %239, %240 : vector<8x128xf32>
    %c7_i32 = arith.constant 7 : i32
    %242 = arith.index_cast %c7_i32 : i32 to index
    %c0_59 = arith.constant 0 : index
    %c0_60 = arith.constant 0 : index
    %243 = vector.load %arg11[%242, %c0_59, %c0_60] : memref<8x8x384xf32, #tpu.memory_space<vmem>>, vector<1x8x384xf32>
    %244 = vector.shape_cast %243 : vector<1x8x384xf32> to vector<8x384xf32>
    %245 = arith.truncf %241 : vector<8x128xf32> to vector<8x128xbf16>
    %cst_61 = arith.constant dense<0.000000e+00> : vector<8x384xf32>
    %246 = tpu.matmul %245, %13, %cst_61 {dimension_numbers = #tpu.dot_dimension_numbers<[1], [0], [0], [1], [0, 0, 1, 1], [], []>} : vector<8x128xbf16>, vector<128x384xbf16>, vector<8x384xf32> -> vector<8x384xf32>
    %247 = vector.extract_strided_slice %244 {offsets = [0, 0], sizes = [8, 128], strides = [1, 1]} : vector<8x384xf32> to vector<8x128xf32>
    %248 = vector.extract_strided_slice %246 {offsets = [0, 0], sizes = [8, 128], strides = [1, 1]} : vector<8x384xf32> to vector<8x128xf32>
    %249 = arith.addf %247, %248 : vector<8x128xf32>
    %250 = arith.negf %249 : vector<8x128xf32>
    %251 = math.exp %250 : vector<8x128xf32>
    %cst_62 = arith.constant 1.000000e+00 : f32
    %252 = vector.broadcast %cst_62 : f32 to vector<8x128xf32>
    %253 = arith.addf %252, %251 : vector<8x128xf32>
    %254 = arith.divf %252, %253 : vector<8x128xf32>
    %255 = vector.extract_strided_slice %244 {offsets = [0, 128], sizes = [8, 128], strides = [1, 1]} : vector<8x384xf32> to vector<8x128xf32>
    %256 = vector.extract_strided_slice %246 {offsets = [0, 128], sizes = [8, 128], strides = [1, 1]} : vector<8x384xf32> to vector<8x128xf32>
    %257 = arith.addf %255, %256 : vector<8x128xf32>
    %258 = arith.negf %257 : vector<8x128xf32>
    %259 = math.exp %258 : vector<8x128xf32>
    %cst_63 = arith.constant 1.000000e+00 : f32
    %260 = vector.broadcast %cst_63 : f32 to vector<8x128xf32>
    %261 = arith.addf %260, %259 : vector<8x128xf32>
    %262 = arith.divf %260, %261 : vector<8x128xf32>
    %263 = vector.extract_strided_slice %244 {offsets = [0, 256], sizes = [8, 128], strides = [1, 1]} : vector<8x384xf32> to vector<8x128xf32>
    %264 = vector.extract_strided_slice %246 {offsets = [0, 256], sizes = [8, 128], strides = [1, 1]} : vector<8x384xf32> to vector<8x128xf32>
    %265 = arith.addf %264, %16 : vector<8x128xf32>
    %266 = arith.mulf %254, %265 : vector<8x128xf32>
    %267 = arith.addf %263, %266 : vector<8x128xf32>
    %268 = math.tanh %267 : vector<8x128xf32>
    %cst_64 = arith.constant 1.000000e+00 : f32
    %269 = vector.broadcast %cst_64 : f32 to vector<8x128xf32>
    %270 = arith.subf %269, %262 : vector<8x128xf32>
    %271 = arith.mulf %270, %268 : vector<8x128xf32>
    %272 = arith.mulf %262, %241 : vector<8x128xf32>
    %273 = arith.addf %271, %272 : vector<8x128xf32>
    %c8_i32 = arith.constant 8 : i32
    %c0_65 = arith.constant 0 : index
    %c0_66 = arith.constant 0 : index
    %274 = vector.load %arg10[%c0_65, %c0_66] : memref<8x128xf32, #tpu.memory_space<vmem>>, vector<8x128xf32>
    tpu.vector_store %arg10[%c0_65, %c0_66], %273 {strides = array<i32>} : memref<8x128xf32, #tpu.memory_space<vmem>>, vector<8x128xf32>,
    %c0_i32_67 = arith.constant 0 : i32
    %275 = arith.cmpi eq, %arg1, %c0_i32_67 : i32
    %276 = arith.extui %275 : i1 to i32
    %c0_i32_68 = arith.constant 0 : i32
    %277 = arith.cmpi ne, %276, %c0_i32_68 : i32
    scf.if %277 {
      %278 = arith.truncf %273 : vector<8x128xf32> to vector<8x128xbf16>
      %c0_69 = arith.constant 0 : index
      %c0_70 = arith.constant 0 : index
      %279 = vector.load %arg7[%c0_69, %c0_70] : memref<128x4xbf16, #tpu.memory_space<vmem>>, vector<128x4xbf16>
      %cst_71 = arith.constant dense<0.000000e+00> : vector<8x4xf32>
      %280 = tpu.matmul %278, %279, %cst_71 {dimension_numbers = #tpu.dot_dimension_numbers<[1], [0], [0], [1], [0, 0, 1, 1], [], []>} : vector<8x128xbf16>, vector<128x4xbf16>, vector<8x4xf32> -> vector<8x4xf32>
      %c0_72 = arith.constant 0 : index
      %c0_73 = arith.constant 0 : index
      %281 = vector.load %arg8[%c0_72, %c0_73] : memref<1x4xf32, #tpu.memory_space<vmem>>, vector<1x4xf32>
      %282 = vector.broadcast %281 : vector<1x4xf32> to vector<8x4xf32>
      %283 = arith.addf %280, %282 : vector<8x4xf32>
      %c0_74 = arith.constant 0 : index
      %c0_75 = arith.constant 0 : index
      %284 = vector.load %arg9[%c0_74, %c0_75] : memref<8x4xf32, #tpu.memory_space<vmem>>, vector<8x4xf32>
      tpu.vector_store %arg9[%c0_74, %c0_75], %283 {strides = array<i32>} : memref<8x4xf32, #tpu.memory_space<vmem>>, vector<8x4xf32>,
    } else {
    }
    return
  }
  func.func @transform_0(%arg0: i32, %arg1: i32) -> (i32, i32, i32) {
    %c0_i32 = arith.constant 0 : i32
    %c0_i32_0 = arith.constant 0 : i32
    return %arg1, %arg0, %c0_i32 : i32, i32, i32
  }
  func.func @transform_1(%arg0: i32, %arg1: i32) -> (i32, i32) {
    %c0_i32 = arith.constant 0 : i32
    %c0_i32_0 = arith.constant 0 : i32
    %c0_i32_1 = arith.constant 0 : i32
    return %c0_i32, %c0_i32_0 : i32, i32
  }
  func.func @transform_2(%arg0: i32, %arg1: i32) -> (i32, i32) {
    %c0_i32 = arith.constant 0 : i32
    %c0_i32_0 = arith.constant 0 : i32
    %c0_i32_1 = arith.constant 0 : i32
    return %c0_i32, %c0_i32_0 : i32, i32
  }
  func.func @transform_3(%arg0: i32, %arg1: i32) -> (i32, i32) {
    %c0_i32 = arith.constant 0 : i32
    %c0_i32_0 = arith.constant 0 : i32
    %c0_i32_1 = arith.constant 0 : i32
    return %c0_i32, %c0_i32_0 : i32, i32
  }
  func.func @transform_4(%arg0: i32, %arg1: i32) -> (i32, i32) {
    %c0_i32 = arith.constant 0 : i32
    %c0_i32_0 = arith.constant 0 : i32
    %c0_i32_1 = arith.constant 0 : i32
    return %c0_i32, %c0_i32_0 : i32, i32
  }
  func.func @transform_5(%arg0: i32, %arg1: i32) -> (i32, i32) {
    %c0_i32 = arith.constant 0 : i32
    %c0_i32_0 = arith.constant 0 : i32
    %c0_i32_1 = arith.constant 0 : i32
    return %c0_i32, %c0_i32_0 : i32, i32
  }
  func.func @transform_6(%arg0: i32, %arg1: i32) -> (i32, i32) {
    %c0_i32 = arith.constant 0 : i32
    %c0_i32_0 = arith.constant 0 : i32
    %c0_i32_1 = arith.constant 0 : i32
    return %c0_i32, %c0_i32_0 : i32, i32
  }
  func.func @transform_7(%arg0: i32, %arg1: i32) -> (i32, i32) {
    %c0_i32 = arith.constant 0 : i32
    %c0_i32_0 = arith.constant 0 : i32
    return %arg0, %c0_i32 : i32, i32
  }
}

</mosaic_0001>

<bundles_post_ra>
// kernel: tpu_custom_call.1
= control target key start
LH: loop header
LB: loop body
LE: loop exit
PB: predicated region body
PF: predicated region fallthrough
CT: control target
= control target key end

     0   :  { %12 = vsyncpa [#allocation5], 0  ;;  %s1498_s27 = smov [#allocation4]   ;;  %s1499_s29 = smov 192   ;;  %s1996_s0 = inlined_call_operand.vmem [shape: f32[8,8,4], index: 0, kind: input, shape index: {}]   ;;  %s1997_s1 = inlined_call_operand.vmem [shape: bf16[4,384], index: 1, kind: input, shape index: {}]   ;;  %s1998_s2 = inlined_call_operand.hbm [shape: bf16[128,384], index: 2, kind: input, shape index: {}]   ;;  %s1999_s3 = inlined_call_operand.vmem [shape: f32[1,384], index: 3, kind: input, shape index: {}]   ;;  %s2000_s4 = inlined_call_operand.vmem [shape: f32[1,128], index: 4, kind: input, shape index: {}]   ;;  %s2001_s5 = inlined_call_operand.vmem [shape: bf16[128,4], index: 5, kind: input, shape index: {}]   ;;  %s2002_s6 = inlined_call_operand.vmem [shape: f32[1,4], index: 6, kind: input, shape index: {}]   ;;  %s2003_s7 = inlined_call_operand.vmem [shape: f32[8,4], index: 7, kind: output, shape index: {}]  }
   0x1   :  { %s21_s26 = sshll.u32 %s1998_s2, 4  ;;  %s23_s28 = sshll.u32 %s1498_s27, 4  ;;  %s22_s26 = int_to_ptr.hbm [resolvable:$true] %s21_s26  ;;  %s24_s28 = int_to_ptr.vmem [resolvable:$true] %s23_s28 }
   0x2   :  { %s1500_s30 = smov 12  }
   0x3   :  { %29 = dma.hbm_to_vmem [thread:$0]  %s22_s26, 3072, %s24_s28, [#allocation5], %s1499_s29, %s1499_s29, %s1500_s30  }
   0x4   :  { %1496 = dma.done.wait [#allocation5], 3072  }
   0x5   :  { %1497 = vsyncadd [#allocation5], 4294964224  ;;  %v1295_v0 = vld [vmem:[#allocation4 + $0xa8] sm:$0xf]  ;;  %v1375_v1 = vld [vmem:[#allocation4 + $0xb0] sm:$0xf0] }
   0x6   :  { %v1283_v2 = vld [vmem:[#allocation4 + $0x90] sm:$0xf]  ;;  %v1545_v3 = vor.u32 %v1375_v1, %v1295_v0  ;;  %v1372_v4 = vld [vmem:[#allocation4 + $0x98] sm:$0xf0]  ;;  %v1271_v7 = vld [vmem:[#allocation4 + $0x78] sm:$0xf] }
   0x7   :  { %v60_v5 = vld [vmem:[%s1997_s1] sm:$0x3f]  ;;  %v1551_v6 = vor.u32 %v1372_v4, %v1283_v2  ;;  %v1369_v8 = vld [vmem:[#allocation4 + $0x80] sm:$0xf0]  ;;  %v1303_v9 = vld [vmem:[#allocation4 + $0xb0] sm:$0xf] }
   0x8   :  { %70 = vst [vmem:[#allocation1] ss:$4 sm:$0xff] %v60_v5  ;;  %374 = vmatpush.bf16.msra.mxu3 %v1545_v3  ;;  %v1376_v10 = vld [vmem:[#allocation4 + $0xb8] sm:$0xf0]  ;;  %vm87_vm0 = vcmask 1041408   ;;  %v1554_v11 = vor.u32 %v1369_v8, %v1271_v7  ;;  %v49_v13 = vld [vmem:[%s1996_s0 + $0x8] sm:$0xff] }
   0x9   :  { %v48_v12 = vld [vmem:[%s1996_s0] sm:$0xff]  ;;  %v1259_v14 = vld [vmem:[#allocation4 + $0x60] sm:$0xf]  ;;  %v1366_v15 = vld [vmem:[#allocation4 + $0x68] sm:$0xf0]  ;;  %v1562_v16 = vor.u32 %v1376_v10, %v1303_v9  ;;  %vm74_vm1 = vcmask 31744  }
   0xa   :  { %v1291_v17 = vld [vmem:[#allocation4 + $0x98] sm:$0xf]  ;;  %v1373_v19 = vld [vmem:[#allocation4 + $0xa0] sm:$0xf0]  ;;  %v1565_v21 = vpack.c.bf16 %v49_v13, %v48_v12  ;;  %v1568_v22 = vor.u32 %v1366_v15, %v1259_v14  ;;  %v1247_v23 = vld [vmem:[#allocation4 + $0x48] sm:$0xf] }
   0xb   :  { %v1363_v24 = vld [vmem:[#allocation4 + $0x50] sm:$0xf0]  ;;  %v1571_v25 = vor.u32 %v1373_v19, %v1291_v17  ;;  %v1279_v26 = vld [vmem:[#allocation4 + $0x80] sm:$0xf]  ;;  %v1370_v27 = vld [vmem:[#allocation4 + $0x88] sm:$0xf0] }
   0xc   :  { %375 = vmatpush.bf16.msra.mxu3 %v1551_v6  ;;  %v1576_v28 = vor.u32 %v1363_v24, %v1247_v23  ;;  %v1235_v29 = vld [vmem:[#allocation4 + $0x30] sm:$0xf]  ;;  %v1360_v30 = vld [vmem:[#allocation4 + $0x38] sm:$0xf0]  ;;  %v1579_v31 = vor.u32 %v1370_v27, %v1279_v26  ;;  %v1267_v32 = vld [vmem:[#allocation4 + $0x68] sm:$0xf] }
   0xd   :  { %v1367_v33 = vld [vmem:[#allocation4 + $0x70] sm:$0xf0]  ;;  %v1582_v34 = vor.u32 %v1360_v30, %v1235_v29  ;;  %v1223_v35 = vld [vmem:[#allocation4 + $0x18] sm:$0xf]  ;;  %v1357_v36 = vld [vmem:[#allocation4 + $0x20] sm:$0xf0] }
   0xe   :  { %v1585_v37 = vor.u32 %v1367_v33, %v1267_v32  ;;  %v1589_v40 = vor.u32 %v1357_v36, %v1223_v35  ;;  %v50_v41 = vld [vmem:[%s1996_s0 + $0x10] sm:$0xff]  ;;  %v51_v42 = vld [vmem:[%s1996_s0 + $0x18] sm:$0xff]  ;;  %v1211_v43 = vld [vmem:[#allocation4] sm:$0xf]  ;;  %v1501_v1 = vmov 0.0|0.0  }
   0xf   :  { %v71_v18 = vld.sshfl [vmem:[#allocation1] sm:$0xff pattern:$0x73625140]  ;;  %v72_v38 = vld.sshfl [vmem:[#allocation1 + $0x8] sm:$0xff pattern:$0x73625140]  ;;  %v1603_v50 = vpack.c.bf16 %v51_v42, %v50_v41 }
  0x10   :  { %v88_v20 = vsel %vm87_vm0, %v71_v18, 0  ;;  %376 = vmatpush.bf16.msra.mxu3 %v1554_v11  ;;  %v90_v39 = vsel %vm87_vm0, %v72_v38, 0  ;;  %v1354_v44 = vld [vmem:[#allocation4 + $0x8] sm:$0xf0]  ;;  %v1255_v45 = vld [vmem:[#allocation4 + $0x50] sm:$0xf] }
  0x11   :  { %101 = vmatpush.bf16.msra.mxu0 %v88_v20  ;;  %130 = vmatpush.bf16.msra.mxu1 %v90_v39  ;;  %v1364_v46 = vld [vmem:[#allocation4 + $0x58] sm:$0xf0]  ;;  %v1374_v47 = vld [vmem:[#allocation4 + $0xac] sm:$0xf]  ;;  %v1297_v48 = vld [vmem:[#allocation4 + $0xb4] sm:$0xf0]  ;;  %v1606_v51 = vor.u32 %v1354_v44, %v1211_v43 }
  0x12   :  { %v1599_v49 = vor.u32 %v1364_v46, %v1255_v45  ;;  %v1609_v52 = vor.u32 %v1374_v47, %v1297_v48  ;;  %v1371_v53 = vld [vmem:[#allocation4 + $0x94] sm:$0xf]  ;;  %v1285_v54 = vld [vmem:[#allocation4 + $0x9c] sm:$0xf0]  ;;  %v1243_v55 = vld [vmem:[#allocation4 + $0x38] sm:$0xf] }
  0x13   :  { %v1361_v56 = vld [vmem:[#allocation4 + $0x40] sm:$0xf0]  ;;  %v1231_v57 = vld [vmem:[#allocation4 + $0x20] sm:$0xf]  ;;  %v1617_v58 = vor.u32 %v1371_v53, %v1285_v54  ;;  %v1358_v61 = vld [vmem:[#allocation4 + $0x28] sm:$0xf0] }
  0x14   :  { %1197 = vmatmul.msk.bf16.vlgmr.msra.gmra.mxu0 %vm74_vm1, %v1565_v21  ;;  %377 = vmatpush.bf16.msra.mxu3 %v1568_v22  ;;  %v1619_v59 = vor.u32 %v1361_v56, %v1243_v55  ;;  %v73_v60 = vld.sshfl [vmem:[#allocation1 + $0x10] sm:$0xff pattern:$0x73625140]  ;;  %v1368_v62 = vld [vmem:[#allocation4 + $0x7c] sm:$0xf]  ;;  %v1624_v2 = vor.u32 %v1358_v61, %v1231_v57  ;;  %v53_v13 = vld [vmem:[%s1996_s0 + $0x28] sm:$0xff] }
  0x15   :  { %400 = vmatpush.bf16.msrb.mxu0 %v1562_v16  ;;  %466 = vmatpush.bf16.msrb.mxu1 %v1545_v3  ;;  %v1273_v63 = vld [vmem:[#allocation4 + $0x84] sm:$0xf0]  ;;  %v92_v0 = vsel %vm87_vm0, %v73_v60, 0  ;;  %v1355_v5 = vld [vmem:[#allocation4 + $0x10] sm:$0xf0]  ;;  %v52_v12 = vld [vmem:[%s1996_s0 + $0x20] sm:$0xff] }
  0x16   :  { %1201 = vmatmul.msk.bf16.vlgmr.msra.gmra.mxu1 %vm74_vm1, %v1565_v21  ;;  %159 = vmatpush.bf16.msra.mxu2 %v92_v0  ;;  %v1219_v4 = vld [vmem:[#allocation4 + $0x8] sm:$0xf]  ;;  %v1628_v7 = vor.u32 %v1368_v62, %v1273_v63  ;;  %v1365_v8 = vld [vmem:[#allocation4 + $0x64] sm:$0xf]  ;;  %v1261_v9 = vld [vmem:[#allocation4 + $0x6c] sm:$0xf0]  ;;  %v58_v18 = vpack.c.bf16 %v53_v13, %v52_v12 }
  0x17   :  { %v1634_v10 = vor.u32 %v1355_v5, %v1219_v4  ;;  %v1644_v14 = vor.u32 %v1365_v8, %v1261_v9  ;;  %v1362_v15 = vld [vmem:[#allocation4 + $0x4c] sm:$0xf]  ;;  %v1249_v17 = vld [vmem:[#allocation4 + $0x54] sm:$0xf0]  ;;  %v1359_v20 = vld [vmem:[#allocation4 + $0x34] sm:$0xf] }
  0x18   :  { %378 = vmatpush.bf16.msra.mxu3 %v1576_v28  ;;  %v1653_v19 = vor.u32 %v1362_v15, %v1249_v17  ;;  %v1356_v24 = vld [vmem:[#allocation4 + $0x1c] sm:$0xf]  ;;  %v1225_v26 = vld [vmem:[#allocation4 + $0x24] sm:$0xf0]  ;;  %v1353_v29 = vld [vmem:[#allocation4 + $0x4] sm:$0xf] }
  0x19   :  { %401 = vmatpush.bf16.msrb.mxu0 %v1571_v25  ;;  %467 = vmatpush.bf16.msrb.mxu1 %v1551_v6  ;;  %v1666_v27 = vor.u32 %v1356_v24, %v1225_v26  ;;  %v1213_v30 = vld [vmem:[#allocation4 + $0xc] sm:$0xf0]  ;;  %v54_v32 = vld [vmem:[%s1996_s0 + $0x30] sm:$0xff]  ;;  %v61_v39 = vld [vmem:[%s1999_s3] sm:$0x7] }
  0x1a   :  { %479 = vmatpush.bf16.msrb.mxu2 %v1609_v52  ;;  %v55_v33 = vld [vmem:[%s1996_s0 + $0x38] sm:$0xff]  ;;  %v1680_v35 = vor.u32 %v1353_v29, %v1213_v30  ;;  %v63_v41 = vperm.slane %v61_v39, 0  ;;  %v1749_v0 = vperm.slane %v61_v39, 1  ;;  %v1759_v30 = vld [vmem:[%s2000_s4] ss:$0 sm:$0xff] }
  0x1b   :  { %1205 = vmatmul.msk.bf16.vlgmr.msra.gmra.mxu2 %vm74_vm1, %v1565_v21  ;;  %v1237_v21 = vld [vmem:[#allocation4 + $0x3c] sm:$0xf0]  ;;  %v59_v36 = vpack.c.bf16 %v55_v33, %v54_v32 }
  0x1c   :  { %379 = vmatpush.bf16.msra.mxu3 %v1582_v34  ;;  %v1660_v23 = vor.u32 %v1359_v20, %v1237_v21 }
  0x1d   :  { %402 = vmatpush.bf16.msrb.mxu0 %v1579_v31  ;;  %468 = vmatpush.bf16.msrb.mxu1 %v1554_v11 }
  0x1e   :  { %480 = vmatpush.bf16.msrb.mxu2 %v1617_v58 }
  0x20   :  { %380 = vmatpush.bf16.msra.mxu3 %v1589_v40 }
  0x21   :  { %403 = vmatpush.bf16.msrb.mxu0 %v1585_v37  ;;  %469 = vmatpush.bf16.msrb.mxu1 %v1568_v22 }
  0x22   :  { %481 = vmatpush.bf16.msrb.mxu2 %v1628_v7 }
  0x24   :  { %1198 = vmatmul.msk.bf16.gmra.mxu0 %vm74_vm1, %v1603_v50  ;;  %381 = vmatpush.bf16.msra.mxu3 %v1606_v51 }
  0x25   :  { %404 = vmatpush.bf16.msrb.mxu0 %v1599_v49  ;;  %470 = vmatpush.bf16.msrb.mxu1 %v1576_v28 }
  0x26   :  { %1202 = vmatmul.msk.bf16.gmra.mxu1 %vm74_vm1, %v1603_v50  ;;  %482 = vmatpush.bf16.msrb.mxu2 %v1644_v14 }
  0x27   :  { %382 = vmatmul.bf16.vlgmr.msra.gmra.mxu3 %v1501_v1 }
  0x28   :  { %387 = vmatpush.bf16.msrb.mxu3 %v1609_v52 }
  0x29   :  { %405 = vmatpush.bf16.msrb.mxu0 %v1619_v59  ;;  %471 = vmatpush.bf16.msrb.mxu1 %v1582_v34 }
  0x2a   :  { %483 = vmatpush.bf16.msrb.mxu2 %v1653_v19 }
  0x2b   :  { %1206 = vmatmul.msk.bf16.gmra.mxu2 %vm74_vm1, %v1603_v50 }
  0x2c   :  { %388 = vmatpush.bf16.msrb.mxu3 %v1617_v58 }
  0x2d   :  { %406 = vmatpush.bf16.msrb.mxu0 %v1624_v2  ;;  %472 = vmatpush.bf16.msrb.mxu1 %v1589_v40 }
  0x2e   :  { %484 = vmatpush.bf16.msrb.mxu2 %v1660_v23 }
  0x30   :  { %389 = vmatpush.bf16.msrb.mxu3 %v1628_v7 }
  0x31   :  { %407 = vmatpush.bf16.msrb.mxu0 %v1634_v10  ;;  %473 = vmatpush.bf16.msrb.mxu1 %v1606_v51 }
  0x32   :  { %485 = vmatpush.bf16.msrb.mxu2 %v1666_v27 }
  0x34   :  { %390 = vmatpush.bf16.msrb.mxu3 %v1644_v14  ;;  %1199 = vmatmul.msk.bf16.gmra.mxu0 %vm74_vm1, %v58_v18 }
  0x35   :  { %558 = vmatpush.bf16.msra.mxu0 %v1545_v3  ;;  %571 = vmatpush.bf16.msra.mxu1 %v1609_v52 }
  0x36   :  { %1203 = vmatmul.msk.bf16.gmra.mxu1 %vm74_vm1, %v58_v18  ;;  %486 = vmatpush.bf16.msrb.mxu2 %v1680_v35 }
  0x38   :  { %391 = vmatpush.bf16.msrb.mxu3 %v1653_v19 }
  0x39   :  { %559 = vmatpush.bf16.msra.mxu0 %v1551_v6  ;;  %572 = vmatpush.bf16.msra.mxu1 %v1617_v58 }
  0x3a   :  { %584 = vmatpush.bf16.msra.mxu2 %v1562_v16 }
  0x3b   :  { %1207 = vmatmul.msk.bf16.gmra.mxu2 %vm74_vm1, %v58_v18 }
  0x3c   :  { %392 = vmatpush.bf16.msrb.mxu3 %v1660_v23 }
  0x3d   :  { %560 = vmatpush.bf16.msra.mxu0 %v1554_v11  ;;  %573 = vmatpush.bf16.msra.mxu1 %v1628_v7 }
  0x3e   :  { %585 = vmatpush.bf16.msra.mxu2 %v1571_v25 }
  0x40   :  { %393 = vmatpush.bf16.msrb.mxu3 %v1666_v27 }
  0x41   :  { %561 = vmatpush.bf16.msra.mxu0 %v1568_v22  ;;  %574 = vmatpush.bf16.msra.mxu1 %v1644_v14 }
  0x42   :  { %586 = vmatpush.bf16.msra.mxu2 %v1579_v31 }
  0x44   :  { %394 = vmatpush.bf16.msrb.mxu3 %v1680_v35  ;;  %1200 = vmatmul.msk.bf16.gmra.mxu0 %vm74_vm1, %v59_v36 }
  0x45   :  { %562 = vmatpush.bf16.msra.mxu0 %v1576_v28  ;;  %575 = vmatpush.bf16.msra.mxu1 %v1653_v19 }
  0x46   :  { %1204 = vmatmul.msk.bf16.gmra.mxu1 %vm74_vm1, %v59_v36  ;;  %587 = vmatpush.bf16.msra.mxu2 %v1585_v37 }
  0x47   :  { %395 = vmatmul.bf16.vlgmr.msrb.gmra.mxu3 %v1501_v1 }
  0x48   :  { %492 = vmatpush.bf16.msra.mxu3 %v1562_v16 }
  0x49   :  { %563 = vmatpush.bf16.msra.mxu0 %v1582_v34  ;;  %576 = vmatpush.bf16.msra.mxu1 %v1660_v23 }
  0x4a   :  { %588 = vmatpush.bf16.msra.mxu2 %v1599_v49 }
  0x4b   :  { %1208 = vmatmul.msk.bf16.gmra.mxu2 %vm74_vm1, %v59_v36 }
  0x4c   :  { %493 = vmatpush.bf16.msra.mxu3 %v1571_v25 }
  0x4d   :  { %564 = vmatpush.bf16.msra.mxu0 %v1589_v40  ;;  %577 = vmatpush.bf16.msra.mxu1 %v1666_v27 }
  0x4e   :  { %589 = vmatpush.bf16.msra.mxu2 %v1619_v59 }
  0x50   :  { %494 = vmatpush.bf16.msra.mxu3 %v1579_v31 }
  0x51   :  { %565 = vmatpush.bf16.msra.mxu0 %v1606_v51  ;;  %578 = vmatpush.bf16.msra.mxu1 %v1680_v35 }
  0x52   :  { %590 = vmatpush.bf16.msra.mxu2 %v1624_v2 }
  0x54   :  { %495 = vmatpush.bf16.msra.mxu3 %v1585_v37  ;;  %408 = vmatmul.bf16.vlgmr.msrb.gmra.mxu0 %v1501_v1 }
  0x55   :  { %663 = vmatpush.bf16.msrb.mxu0 %v1609_v52 }
  0x56   :  { %591 = vmatpush.bf16.msra.mxu2 %v1634_v10 }
  0x58   :  { %496 = vmatpush.bf16.msra.mxu3 %v1599_v49 }
  0x59   :  { %664 = vmatpush.bf16.msrb.mxu0 %v1617_v58 }
  0x5c   :  { %497 = vmatpush.bf16.msra.mxu3 %v1619_v59 }
  0x5d   :  { %665 = vmatpush.bf16.msrb.mxu0 %v1628_v7 }
  0x60   :  { %498 = vmatpush.bf16.msra.mxu3 %v1624_v2 }
  0x61   :  { %666 = vmatpush.bf16.msrb.mxu0 %v1644_v14 }
  0x64   :  { %499 = vmatpush.bf16.msra.mxu3 %v1634_v10 }
  0x65   :  { %667 = vmatpush.bf16.msrb.mxu0 %v1653_v19 }
  0x68   :  { %650 = vmatpush.bf16.msrb.mxu3 %v1545_v3 }
  0x69   :  { %668 = vmatpush.bf16.msrb.mxu0 %v1660_v23 }
  0x6c   :  { %651 = vmatpush.bf16.msrb.mxu3 %v1551_v6 }
  0x6d   :  { %669 = vmatpush.bf16.msrb.mxu0 %v1666_v27 }
  0x70   :  { %652 = vmatpush.bf16.msrb.mxu3 %v1554_v11 }
  0x71   :  { %670 = vmatpush.bf16.msrb.mxu0 %v1680_v35 }
  0x74   :  { %653 = vmatpush.bf16.msrb.mxu3 %v1568_v22 }
  0x78   :  { %654 = vmatpush.bf16.msrb.mxu3 %v1576_v28 }
  0x7c   :  { %655 = vmatpush.bf16.msrb.mxu3 %v1582_v34 }
  0x80   :  { %656 = vmatpush.bf16.msrb.mxu3 %v1589_v40 }
  0x84   :  { %657 = vmatpush.bf16.msrb.mxu3 %v1606_v51 }
  0x91   :  { %v103_v38 = vpop.f32.mrf.mxu0 }
  0x92   :  { %v104_v47 = vadd.f32 %v103_v38, %v63_v41 }
  0x93   :  { %v132_v8 = vpop.f32.mrf.mxu1 }
  0x94   :  { %v133_v9 = vadd.f32 %v132_v8, %v1749_v0 }
  0x99   :  { %v105_v42 = vpop.f32.mrf.mxu0 }
  0x9a   :  { %v1739_v43 = vadd.f32 %v105_v42, %v63_v41 }
  0xa1   :  { %v108_v44 = vpop.f32.mrf.mxu0 }
  0xa2   :  { %v1741_v45 = vadd.f32 %v108_v44, %v63_v41 }
  0xa9   :  { %v110_v46 = vpop.f32.mrf.mxu0 }
  0xaa   :  { %v1743_v48 = vadd.f32 %v110_v46, %v63_v41  ;;  %v383_v50 = vpop.f32.mrf.mxu3  ;;  %v1762_v46 = vperm.slane %v61_v39, 2 }
  0xab   :  { %v413_v53 = vadd.f32 %v383_v50, %v104_v47  ;;  %v161_v50 = vpop.f32.mrf.mxu2 }
  0xad   :  { %v1305_v54 = vmul.f32 -1.442695, %v413_v53 }
  0xaf   :  { %1391 = vpow2.f32 %v1305_v54 }
  0xb1   :  { %v113_v55 = vpop.f32.mrf.mxu0 }
  0xb2   :  { %v1745_v56 = vadd.f32 %v113_v55, %v63_v41  ;;  %v385_v57 = vpop.f32.mrf.mxu3 }
  0xb3   :  { %v162_v57 = vadd.f32 %v161_v50, %v1762_v46 }
  0xb5   :  { %v1392_v60 = vpop.eup %1391 }
  0xb6   :  { %v417_v61 = vadd.f32 1.0, %v1392_v60 }
  0xb8   :  { %1393 = vrcp.f32 %v417_v61  ;;  %v429_v36 = vand.u32 2147483648, %v417_v61  ;;  %vm423_vm3 = vweird.f32 %v417_v61  ;;  %v427_v42 = vand.u32 2147483647, %v417_v61 }
  0xb9   :  { %v115_v62 = vpop.f32.mrf.mxu0 }
  0xba   :  { %v1747_v63 = vadd.f32 %v115_v62, %v63_v41  ;;  %v430_v47 = vor.u32 1.1754944e-38, %v429_v36  ;;  %vm428_vm5 = vcmp.eq.f32.partialorder %v427_v42, 8.507059e+37 }
  0xbe   :  { %v1394_v5 = vpop.eup %1393 }
  0xbf   :  { %v419_v12 = vmul.f32 %v1394_v5, %v417_v61  ;;  %vm424_vm2 = vweird.f32 %v1394_v5 }
  0xc0   :  { %vm425_vm4 = vmor %vm423_vm3, %vm424_vm2 }
  0xc1   :  { %v118_v1 = vpop.f32.mrf.mxu0  ;;  %v420_v20 = vsub.f32 1.0, %v419_v12 }
  0xc2   :  { %v1751_v4 = vadd.f32 %v118_v1, %v63_v41 }
  0xc3   :  { %v421_v24 = vmul.f32 %v1394_v5, %v420_v20 }
  0xc4   :  { %2004 = vst [vmem:[#allocation7_spill] sm:$0xff] %v1751_v4 }
  0xc5   :  { %v422_v32 = vadd.f32 %v1394_v5, %v421_v24 }
  0xc9   :  { %v120_v15 = vpop.f32.mrf.mxu0 }
  0xca   :  { %v396_v13 = vpop.f32.mrf.mxu3  ;;  %v1754_v18 = vadd.f32 %v120_v15, %v63_v41  ;;  %v426_v41 = vsel %vm425_vm4, %v1394_v5, %v422_v32  ;;  %v134_v32 = vpop.f32.mrf.mxu1 }
  0xcb   :  { %v433_v17 = vadd.f32 %v396_v13, %v133_v9  ;;  %v431_v53 = vsel %vm428_vm5, %v430_v47, %v426_v41 }
  0xcc   :  { %2005 = vst [vmem:[#allocation8_spill] sm:$0xff] %v1754_v18 }
  0xcd   :  { %v1306_v21 = vmul.f32 -1.442695, %v433_v17 }
  0xcf   :  { %1395 = vpow2.f32 %v1306_v21 }
  0xd1   :  { %v409_v29 = vpop.f32.mrf.mxu0 }
  0xd2   :  { %v398_v26 = vpop.f32.mrf.mxu3  ;;  %v453_v44 = vadd.f32 %v1759_v30, %v409_v29  ;;  %v1793_v36 = vpop.f32.mrf.mxu1 }
  0xd4   :  { %v454_v55 = vmul.f32 %v453_v44, %v431_v53 }
  0xd5   :  { %v1396_v33 = vpop.eup %1395 }
  0xd6   :  { %v437_v38 = vadd.f32 1.0, %v1396_v33  ;;  %v455_v1 = vadd.f32 %v454_v55, %v162_v57  ;;  %v163_v33 = vpop.f32.mrf.mxu2 }
  0xd8   :  { %1397 = vrcp.f32 %v437_v38  ;;  %v449_v61 = vand.u32 2147483648, %v437_v38  ;;  %v447_v5 = vand.u32 2147483647, %v437_v38  ;;  %vm443_vm7 = vweird.f32 %v437_v38 }
  0xd9   :  { %v411_v54 = vpop.f32.mrf.mxu0  ;;  %1399 = vtanh.f32 %v455_v1 }
  0xda   :  { %v450_v39 = vor.u32 1.1754944e-38, %v449_v61  ;;  %vm448_vm9 = vcmp.eq.f32.partialorder %v447_v5, 8.507059e+37  ;;  %v1797_v42 = vpop.f32.mrf.mxu1  ;;  %v135_v61 = vadd.f32 %v134_v32, %v1749_v0 }
  0xde   :  { %v1398_v60 = vpop.eup %1397 }
  0xdf   :  { %v439_v62 = vmul.f32 %v1398_v60, %v437_v38  ;;  %vm444_vm6 = vweird.f32 %v1398_v60  ;;  %v1400_v20 = vpop.eup %1399  ;;  %v1795_v38 = vpop.f32.mrf.mxu2 }
  0xe0   :  { %vm445_vm8 = vmor %vm443_vm7, %vm444_vm6 }
  0xe1   :  { %v440_v8 = vsub.f32 1.0, %v439_v62 }
  0xe2   :  { %v1801_v44 = vpop.f32.mrf.mxu1 }
  0xe3   :  { %v441_v9 = vmul.f32 %v1398_v60, %v440_v8 }
  0xe5   :  { %v442_v12 = vadd.f32 %v1398_v60, %v441_v9 }
  0xe7   :  { %v446_v13 = vsel %vm445_vm8, %v1398_v60, %v442_v12  ;;  %v1799_v41 = vpop.f32.mrf.mxu2 }
  0xe8   :  { %v451_v15 = vsel %vm448_vm9, %v450_v39, %v446_v13 }
  0xe9   :  { %v457_v17 = vsub.f32 1.0, %v451_v15  ;;  %v459_v24 = vmul.f32 0.0, %v451_v15 }
  0xea   :  { %v1805_v50 = vpop.f32.mrf.mxu1 }
  0xeb   :  { %v458_v21 = vmul.f32 %v1400_v20, %v457_v17 }
  0xed   :  { %v1765_v26 = vadd.f32 %v459_v24, %v458_v21 }
  0xef   :  { %v465_v29 = vpack.c.bf16 %v1765_v26, %v1765_v26  ;;  %v1803_v47 = vpop.f32.mrf.mxu2 }
  0xf1   :  { %474 = vmatmul.bf16.vlgmr.msrb.gmra.mxu1 %v465_v29  ;;  %487 = vmatmul.bf16.vlgmr.msrb.gmra.mxu2 %v465_v29 }
  0xf2   :  { %500 = vmatmul.bf16.vlgmr.msra.gmra.mxu3 %v465_v29  ;;  %676 = vmatpush.bf16.msrb.mxu1 %v1562_v16  ;;  %v1809_v54 = vpop.f32.mrf.mxu1 }
  0xf3   :  { %742 = vmatpush.bf16.msrb.mxu2 %v1545_v3  ;;  %755 = vmatpush.bf16.msra.mxu3 %v1609_v52 }
  0xf6   :  { %677 = vmatpush.bf16.msrb.mxu1 %v1571_v25 }
  0xf7   :  { %743 = vmatpush.bf16.msrb.mxu2 %v1551_v6  ;;  %756 = vmatpush.bf16.msra.mxu3 %v1617_v58  ;;  %v1807_v53 = vpop.f32.mrf.mxu2 }
  0xfa   :  { %678 = vmatpush.bf16.msrb.mxu1 %v1579_v31  ;;  %v1813_v57 = vpop.f32.mrf.mxu1 }
  0xfb   :  { %744 = vmatpush.bf16.msrb.mxu2 %v1554_v11  ;;  %757 = vmatpush.bf16.msra.mxu3 %v1628_v7  ;;  %2007 = vst [vmem:[#allocation10_spill] sm:$0xff] %v1813_v57 }
  0xfe   :  { %679 = vmatpush.bf16.msrb.mxu1 %v1585_v37 }
  0xff   :  { %745 = vmatpush.bf16.msrb.mxu2 %v1568_v22  ;;  %758 = vmatpush.bf16.msra.mxu3 %v1644_v14  ;;  %v1811_v55 = vpop.f32.mrf.mxu2 }
 0x100   :  { %2006 = vst [vmem:[#allocation9_spill] sm:$0xff] %v1811_v55 }
 0x102   :  { %680 = vmatpush.bf16.msrb.mxu1 %v1599_v49 }
 0x103   :  { %746 = vmatpush.bf16.msrb.mxu2 %v1576_v28  ;;  %759 = vmatpush.bf16.msra.mxu3 %v1653_v19 }
 0x106   :  { %681 = vmatpush.bf16.msrb.mxu1 %v1619_v59 }
 0x107   :  { %747 = vmatpush.bf16.msrb.mxu2 %v1582_v34  ;;  %760 = vmatpush.bf16.msra.mxu3 %v1660_v23  ;;  %v1815_v60 = vpop.f32.mrf.mxu2 }
 0x108   :  { %2008 = vst [vmem:[#allocation11_spill] sm:$0xff] %v1815_v60 }
 0x10a   :  { %682 = vmatpush.bf16.msrb.mxu1 %v1624_v2 }
 0x10b   :  { %748 = vmatpush.bf16.msrb.mxu2 %v1589_v40  ;;  %761 = vmatpush.bf16.msra.mxu3 %v1666_v27 }
 0x10e   :  { %683 = vmatpush.bf16.msrb.mxu1 %v1634_v10 }
 0x10f   :  { %749 = vmatpush.bf16.msrb.mxu2 %v1606_v51  ;;  %762 = vmatpush.bf16.msra.mxu3 %v1680_v35 }
 0x16e   :  { %v475_v62 = vpop.f32.mrf.mxu1 }
 0x16f   :  { %v505_v1 = vadd.f32 %v475_v62, %v1739_v43 }
 0x171   :  { %v1307_v8 = vmul.f32 -1.442695, %v505_v1 }
 0x173   :  { %1401 = vpow2.f32 %v1307_v8 }
 0x174   :  { %v488_v9 = vpop.f32.mrf.mxu2 }
 0x175   :  { %v525_v5 = vadd.f32 %v488_v9, %v135_v61  ;;  %v501_v12 = vpop.f32.mrf.mxu3 }
 0x176   :  { %v477_v39 = vpop.f32.mrf.mxu1 }
 0x177   :  { %v1308_v13 = vmul.f32 -1.442695, %v525_v5 }
 0x179   :  { %v1402_v15 = vpop.eup %1401  ;;  %1403 = vpow2.f32 %v1308_v13 }
 0x17a   :  { %v509_v17 = vadd.f32 1.0, %v1402_v15 }
 0x17c   :  { %1405 = vrcp.f32 %v509_v17  ;;  %v490_v20 = vpop.f32.mrf.mxu2  ;;  %v521_v1 = vand.u32 2147483648, %v509_v17  ;;  %v519_v8 = vand.u32 2147483647, %v509_v17  ;;  %vm515_vm11 = vweird.f32 %v509_v17 }
 0x17d   :  { %v503_v21 = vpop.f32.mrf.mxu3  ;;  %v545_v20 = vadd.f32 %v1759_v30, %v501_v12 }
 0x17e   :  { %v522_v5 = vor.u32 1.1754944e-38, %v521_v1  ;;  %vm520_vm13 = vcmp.eq.f32.partialorder %v519_v8, 8.507059e+37  ;;  %v164_v21 = vadd.f32 %v163_v33, %v1762_v46 }
 0x17f   :  { %v1404_v24 = vpop.eup %1403 }
 0x180   :  { %v529_v29 = vadd.f32 1.0, %v1404_v24 }
 0x182   :  { %v1406_v60 = vpop.eup %1405  ;;  %1407 = vrcp.f32 %v529_v29  ;;  %v539_v57 = vand.u32 2147483647, %v529_v29  ;;  %vm535_vm15 = vweird.f32 %v529_v29 }
 0x183   :  { %v511_v43 = vmul.f32 %v1406_v60, %v509_v17  ;;  %vm516_vm10 = vweird.f32 %v1406_v60 }
 0x184   :  { %vm517_vm12 = vmor %vm515_vm11, %vm516_vm10  ;;  %vm540_vm2 = vcmp.eq.f32.partialorder %v539_v57, 8.507059e+37 }
 0x185   :  { %v512_v62 = vsub.f32 1.0, %v511_v43  ;;  %v541_v43 = vand.u32 2147483648, %v529_v29 }
 0x187   :  { %v513_v32 = vmul.f32 %v1406_v60, %v512_v62  ;;  %v542_v17 = vor.u32 1.1754944e-38, %v541_v43 }
 0x188   :  { %v1408_v61 = vpop.eup %1407 }
 0x189   :  { %v531_v9 = vmul.f32 %v1408_v61, %v529_v29  ;;  %v514_v39 = vadd.f32 %v1406_v60, %v513_v32  ;;  %vm536_vm14 = vweird.f32 %v1408_v61 }
 0x18a   :  { %vm537_vm0 = vmor %vm535_vm15, %vm536_vm14 }
 0x18b   :  { %v532_v13 = vsub.f32 1.0, %v531_v9  ;;  %v518_v15 = vsel %vm517_vm12, %v1406_v60, %v514_v39 }
 0x18c   :  { %v523_v24 = vsel %vm520_vm13, %v522_v5, %v518_v15 }
 0x18d   :  { %v533_v18 = vmul.f32 %v1408_v61, %v532_v13  ;;  %v546_v62 = vmul.f32 %v545_v20, %v523_v24 }
 0x18f   :  { %v547_v55 = vadd.f32 %v546_v62, %v164_v21  ;;  %v534_v4 = vadd.f32 %v1408_v61, %v533_v18 }
 0x191   :  { %1409 = vtanh.f32 %v547_v55  ;;  %v538_v1 = vsel %vm537_vm0, %v1408_v61, %v534_v4  ;;  %v138_v4 = vadd.f32 %v1793_v36, %v1749_v0 }
 0x192   :  { %v543_v60 = vsel %vm540_vm2, %v542_v17, %v538_v1 }
 0x193   :  { %v549_v32 = vsub.f32 1.0, %v543_v60  ;;  %v551_v33 = vmul.f32 %v543_v60, %v1765_v26 }
 0x197   :  { %v1410_v8 = vpop.eup %1409 }
 0x198   :  { %v550_v12 = vmul.f32 %v1410_v8, %v549_v32 }
 0x19a   :  { %v1822_v9 = vadd.f32 %v551_v33, %v550_v12 }
 0x19c   :  { %v557_v39 = vpack.c.bf16 %v1822_v9, %v1822_v9 }
 0x19e   :  { %566 = vmatmul.bf16.vlgmr.msra.gmra.mxu0 %v557_v39  ;;  %579 = vmatmul.bf16.vlgmr.msra.gmra.mxu1 %v557_v39 }
 0x19f   :  { %592 = vmatmul.bf16.vlgmr.msra.gmra.mxu2 %v557_v39  ;;  %768 = vmatpush.bf16.msra.mxu0 %v1562_v16 }
 0x1a0   :  { %834 = vmatpush.bf16.msra.mxu1 %v1545_v3  ;;  %847 = vmatpush.bf16.msra.mxu2 %v1609_v52 }
 0x1a3   :  { %769 = vmatpush.bf16.msra.mxu0 %v1571_v25 }
 0x1a4   :  { %835 = vmatpush.bf16.msra.mxu1 %v1551_v6  ;;  %848 = vmatpush.bf16.msra.mxu2 %v1617_v58 }
 0x1a7   :  { %770 = vmatpush.bf16.msra.mxu0 %v1579_v31 }
 0x1a8   :  { %836 = vmatpush.bf16.msra.mxu1 %v1554_v11  ;;  %849 = vmatpush.bf16.msra.mxu2 %v1628_v7 }
 0x1ab   :  { %771 = vmatpush.bf16.msra.mxu0 %v1585_v37 }
 0x1ac   :  { %837 = vmatpush.bf16.msra.mxu1 %v1568_v22  ;;  %850 = vmatpush.bf16.msra.mxu2 %v1644_v14 }
 0x1af   :  { %772 = vmatpush.bf16.msra.mxu0 %v1599_v49 }
 0x1b0   :  { %838 = vmatpush.bf16.msra.mxu1 %v1576_v28  ;;  %851 = vmatpush.bf16.msra.mxu2 %v1653_v19 }
 0x1b3   :  { %773 = vmatpush.bf16.msra.mxu0 %v1619_v59 }
 0x1b4   :  { %839 = vmatpush.bf16.msra.mxu1 %v1582_v34  ;;  %852 = vmatpush.bf16.msra.mxu2 %v1660_v23 }
 0x1b7   :  { %774 = vmatpush.bf16.msra.mxu0 %v1624_v2 }
 0x1b8   :  { %840 = vmatpush.bf16.msra.mxu1 %v1589_v40  ;;  %853 = vmatpush.bf16.msra.mxu2 %v1666_v27 }
 0x1bb   :  { %775 = vmatpush.bf16.msra.mxu0 %v1634_v10 }
 0x1bc   :  { %841 = vmatpush.bf16.msra.mxu1 %v1606_v51  ;;  %854 = vmatpush.bf16.msra.mxu2 %v1680_v35 }
 0x21b   :  { %v567_v18 = vpop.f32.mrf.mxu0  ;;  %v580_v26 = vpop.f32.mrf.mxu1 }
 0x21c   :  { %v597_v55 = vadd.f32 %v567_v18, %v1741_v45  ;;  %v617_v57 = vadd.f32 %v580_v26, %v138_v4 }
 0x21e   :  { %v1309_v29 = vmul.f32 -1.442695, %v597_v55  ;;  %v1310_v61 = vmul.f32 -1.442695, %v617_v57 }
 0x220   :  { %1411 = vpow2.f32 %v1309_v29 }
 0x221   :  { %1413 = vpow2.f32 %v1310_v61  ;;  %v167_v61 = vadd.f32 %v1795_v38, %v1762_v46 }
 0x222   :  { %v593_v5 = vpop.f32.mrf.mxu2 }
 0x223   :  { %v569_v13 = vpop.f32.mrf.mxu0  ;;  %v582_v15 = vpop.f32.mrf.mxu1  ;;  %v637_v55 = vadd.f32 %v1759_v30, %v593_v5 }
 0x226   :  { %v1412_v20 = vpop.eup %1411 }
 0x227   :  { %v1414_v21 = vpop.eup %1413  ;;  %v601_v24 = vadd.f32 1.0, %v1412_v20 }
 0x228   :  { %v621_v43 = vadd.f32 1.0, %v1414_v21 }
 0x229   :  { %1415 = vrcp.f32 %v601_v24  ;;  %v613_v8 = vand.u32 2147483648, %v601_v24  ;;  %v611_v33 = vand.u32 2147483647, %v601_v24  ;;  %vm607_vm4 = vweird.f32 %v601_v24 }
 0x22a   :  { %1417 = vrcp.f32 %v621_v43  ;;  %v595_v62 = vpop.f32.mrf.mxu2  ;;  %v633_v13 = vand.u32 2147483648, %v621_v43  ;;  %vm627_vm8 = vweird.f32 %v621_v43  ;;  %v631_v20 = vand.u32 2147483647, %v621_v43 }
 0x22b   :  { %v614_v18 = vor.u32 1.1754944e-38, %v613_v8  ;;  %vm612_vm6 = vcmp.eq.f32.partialorder %v611_v33, 8.507059e+37 }
 0x22c   :  { %vm632_vm10 = vcmp.eq.f32.partialorder %v631_v20, 8.507059e+37 }
 0x22f   :  { %v1416_v36 = vpop.eup %1415 }
 0x230   :  { %v1418_v17 = vpop.eup %1417  ;;  %v603_v1 = vmul.f32 %v1416_v36, %v601_v24  ;;  %vm608_vm3 = vweird.f32 %v1416_v36  ;;  %v634_v24 = vor.u32 1.1754944e-38, %v633_v13 }
 0x231   :  { %v623_v60 = vmul.f32 %v1418_v17, %v621_v43  ;;  %vm609_vm5 = vmor %vm607_vm4, %vm608_vm3  ;;  %vm628_vm7 = vweird.f32 %v1418_v17 }
 0x232   :  { %v604_v45 = vsub.f32 1.0, %v603_v1  ;;  %vm629_vm9 = vmor %vm627_vm8, %vm628_vm7 }
 0x233   :  { %v624_v32 = vsub.f32 1.0, %v623_v60 }
 0x234   :  { %v605_v12 = vmul.f32 %v1416_v36, %v604_v45 }
 0x235   :  { %v625_v39 = vmul.f32 %v1418_v17, %v624_v32 }
 0x236   :  { %v606_v4 = vadd.f32 %v1416_v36, %v605_v12 }
 0x237   :  { %v626_v29 = vadd.f32 %v1418_v17, %v625_v39 }
 0x238   :  { %v610_v26 = vsel %vm609_vm5, %v1416_v36, %v606_v4 }
 0x239   :  { %v615_v57 = vsel %vm612_vm6, %v614_v18, %v610_v26  ;;  %v630_v62 = vsel %vm629_vm9, %v1418_v17, %v626_v29 }
 0x23a   :  { %v638_v15 = vmul.f32 %v637_v55, %v615_v57  ;;  %v635_v36 = vsel %vm632_vm10, %v634_v24, %v630_v62 }
 0x23b   :  { %v641_v1 = vsub.f32 1.0, %v635_v36  ;;  %v643_v45 = vmul.f32 %v635_v36, %v1822_v9  ;;  %v140_v9 = vadd.f32 %v1797_v42, %v1749_v0 }
 0x23c   :  { %v639_v21 = vadd.f32 %v638_v15, %v167_v61 }
 0x23e   :  { %1419 = vtanh.f32 %v639_v21 }
 0x244   :  { %v1420_v60 = vpop.eup %1419 }
 0x245   :  { %v642_v5 = vmul.f32 %v1420_v60, %v641_v1 }
 0x247   :  { %v1857_v32 = vadd.f32 %v643_v45, %v642_v5 }
 0x249   :  { %v649_v38 = vpack.c.bf16 %v1857_v32, %v1857_v32 }
 0x24b   :  { %658 = vmatmul.bf16.vlgmr.msrb.gmra.mxu3 %v649_v38  ;;  %671 = vmatmul.bf16.vlgmr.msrb.gmra.mxu0 %v649_v38 }
 0x24c   :  { %684 = vmatmul.bf16.vlgmr.msrb.gmra.mxu1 %v649_v38  ;;  %860 = vmatpush.bf16.msrb.mxu3 %v1562_v16 }
 0x24d   :  { %926 = vmatpush.bf16.msrb.mxu0 %v1545_v3  ;;  %939 = vmatpush.bf16.msrb.mxu1 %v1609_v52 }
 0x250   :  { %861 = vmatpush.bf16.msrb.mxu3 %v1571_v25 }
 0x251   :  { %927 = vmatpush.bf16.msrb.mxu0 %v1551_v6  ;;  %940 = vmatpush.bf16.msrb.mxu1 %v1617_v58 }
 0x254   :  { %862 = vmatpush.bf16.msrb.mxu3 %v1579_v31 }
 0x255   :  { %928 = vmatpush.bf16.msrb.mxu0 %v1554_v11  ;;  %941 = vmatpush.bf16.msrb.mxu1 %v1628_v7 }
 0x258   :  { %863 = vmatpush.bf16.msrb.mxu3 %v1585_v37 }
 0x259   :  { %929 = vmatpush.bf16.msrb.mxu0 %v1568_v22  ;;  %942 = vmatpush.bf16.msrb.mxu1 %v1644_v14 }
 0x25c   :  { %864 = vmatpush.bf16.msrb.mxu3 %v1599_v49 }
 0x25d   :  { %930 = vmatpush.bf16.msrb.mxu0 %v1576_v28  ;;  %943 = vmatpush.bf16.msrb.mxu1 %v1653_v19 }
 0x260   :  { %865 = vmatpush.bf16.msrb.mxu3 %v1619_v59 }
 0x261   :  { %931 = vmatpush.bf16.msrb.mxu0 %v1582_v34  ;;  %944 = vmatpush.bf16.msrb.mxu1 %v1660_v23 }
 0x264   :  { %866 = vmatpush.bf16.msrb.mxu3 %v1624_v2 }
 0x265   :  { %932 = vmatpush.bf16.msrb.mxu0 %v1589_v40  ;;  %945 = vmatpush.bf16.msrb.mxu1 %v1666_v27 }
 0x268   :  { %867 = vmatpush.bf16.msrb.mxu3 %v1634_v10 }
 0x269   :  { %933 = vmatpush.bf16.msrb.mxu0 %v1606_v51  ;;  %946 = vmatpush.bf16.msrb.mxu1 %v1680_v35 }
 0x2c8   :  { %v672_v43 = vpop.f32.mrf.mxu0 }
 0x2c9   :  { %v709_v17 = vadd.f32 %v672_v43, %v140_v9  ;;  %v685_v8 = vpop.f32.mrf.mxu1 }
 0x2ca   :  { %v729_v38 = vadd.f32 %v1759_v30, %v685_v8 }
 0x2cb   :  { %v1312_v12 = vmul.f32 -1.442695, %v709_v17 }
 0x2cd   :  { %1421 = vpow2.f32 %v1312_v12  ;;  %v169_v12 = vadd.f32 %v1799_v41, %v1762_v46 }
 0x2ce   :  { %v659_v33 = vpop.f32.mrf.mxu3 }
 0x2cf   :  { %v689_v39 = vadd.f32 %v659_v33, %v1743_v48 }
 0x2d0   :  { %v674_v4 = vpop.f32.mrf.mxu0 }
 0x2d1   :  { %v1311_v18 = vmul.f32 -1.442695, %v689_v39  ;;  %v687_v26 = vpop.f32.mrf.mxu1 }
 0x2d3   :  { %v1422_v55 = vpop.eup %1421  ;;  %1423 = vpow2.f32 %v1311_v18 }
 0x2d4   :  { %v713_v57 = vadd.f32 1.0, %v1422_v55 }
 0x2d6   :  { %v661_v29 = vpop.f32.mrf.mxu3  ;;  %1425 = vrcp.f32 %v713_v57  ;;  %v725_v33 = vand.u32 2147483648, %v713_v57  ;;  %vm719_vm0 = vweird.f32 %v713_v57  ;;  %v723_v4 = vand.u32 2147483647, %v713_v57 }
 0x2d8   :  { %v726_v55 = vor.u32 1.1754944e-38, %v725_v33  ;;  %vm724_vm3 = vcmp.eq.f32.partialorder %v723_v4, 8.507059e+37 }
 0x2d9   :  { %v1424_v61 = vpop.eup %1423 }
 0x2da   :  { %v693_v13 = vadd.f32 1.0, %v1424_v61 }
 0x2dc   :  { %1427 = vrcp.f32 %v693_v13  ;;  %v1426_v42 = vpop.eup %1425  ;;  %v705_v36 = vand.u32 2147483648, %v693_v13  ;;  %v703_v48 = vand.u32 2147483647, %v693_v13  ;;  %vm699_vm12 = vweird.f32 %v693_v13 }
 0x2dd   :  { %v715_v15 = vmul.f32 %v1426_v42, %v713_v57  ;;  %vm720_vm15 = vweird.f32 %v1426_v42 }
 0x2de   :  { %v706_v45 = vor.u32 1.1754944e-38, %v705_v36  ;;  %vm704_vm14 = vcmp.eq.f32.partialorder %v703_v48, 8.507059e+37  ;;  %vm721_vm2 = vmor %vm719_vm0, %vm720_vm15 }
 0x2df   :  { %v716_v62 = vsub.f32 1.0, %v715_v15 }
 0x2e1   :  { %v717_v60 = vmul.f32 %v1426_v42, %v716_v62 }
 0x2e2   :  { %v1428_v20 = vpop.eup %1427 }
 0x2e3   :  { %v695_v21 = vmul.f32 %v1428_v20, %v693_v13  ;;  %vm700_vm11 = vweird.f32 %v1428_v20  ;;  %v718_v17 = vadd.f32 %v1426_v42, %v717_v60 }
 0x2e4   :  { %vm701_vm13 = vmor %vm699_vm12, %vm700_vm11 }
 0x2e5   :  { %v696_v24 = vsub.f32 1.0, %v695_v21  ;;  %v722_v26 = vsel %vm721_vm2, %v1426_v42, %v718_v17 }
 0x2e6   :  { %v727_v29 = vsel %vm724_vm3, %v726_v55, %v722_v26 }
 0x2e7   :  { %v697_v1 = vmul.f32 %v1428_v20, %v696_v24  ;;  %v733_v8 = vsub.f32 1.0, %v727_v29  ;;  %v735_v15 = vmul.f32 %v727_v29, %v1857_v32 }
 0x2e9   :  { %v698_v5 = vadd.f32 %v1428_v20, %v697_v1 }
 0x2eb   :  { %v702_v9 = vsel %vm701_vm13, %v1428_v20, %v698_v5 }
 0x2ec   :  { %v707_v43 = vsel %vm704_vm14, %v706_v45, %v702_v9  ;;  %v172_v9 = vadd.f32 %v1803_v47, %v1762_v46 }
 0x2ed   :  { %v730_v39 = vmul.f32 %v729_v38, %v707_v43 }
 0x2ef   :  { %v731_v18 = vadd.f32 %v730_v39, %v169_v12 }
 0x2f1   :  { %1429 = vtanh.f32 %v731_v18 }
 0x2f7   :  { %v1430_v61 = vpop.eup %1429 }
 0x2f8   :  { %v734_v13 = vmul.f32 %v1430_v61, %v733_v8 }
 0x2fa   :  { %v1892_v20 = vadd.f32 %v735_v15, %v734_v13 }
 0x2fc   :  { %v741_v41 = vpack.c.bf16 %v1892_v20, %v1892_v20 }
 0x2fe   :  { %750 = vmatmul.bf16.vlgmr.msrb.gmra.mxu2 %v741_v41  ;;  %763 = vmatmul.bf16.vlgmr.msra.gmra.mxu3 %v741_v41 }
 0x2ff   :  { %776 = vmatmul.bf16.vlgmr.msra.gmra.mxu0 %v741_v41  ;;  %952 = vmatpush.bf16.msrb.mxu2 %v1562_v16 }
 0x300   :  { %1018 = vmatpush.bf16.msra.mxu3 %v1545_v3  ;;  %1031 = vmatpush.bf16.msra.mxu0 %v1609_v52 }
 0x303   :  { %953 = vmatpush.bf16.msrb.mxu2 %v1571_v25 }
 0x304   :  { %1019 = vmatpush.bf16.msra.mxu3 %v1551_v6  ;;  %1032 = vmatpush.bf16.msra.mxu0 %v1617_v58  ;;  %v143_v6 = vadd.f32 %v1801_v44, %v1749_v0 }
 0x307   :  { %954 = vmatpush.bf16.msrb.mxu2 %v1579_v31 }
 0x308   :  { %1020 = vmatpush.bf16.msra.mxu3 %v1554_v11  ;;  %1033 = vmatpush.bf16.msra.mxu0 %v1628_v7 }
 0x30b   :  { %955 = vmatpush.bf16.msrb.mxu2 %v1585_v37 }
 0x30c   :  { %1021 = vmatpush.bf16.msra.mxu3 %v1568_v22  ;;  %1034 = vmatpush.bf16.msra.mxu0 %v1644_v14 }
 0x30f   :  { %956 = vmatpush.bf16.msrb.mxu2 %v1599_v49 }
 0x310   :  { %1022 = vmatpush.bf16.msra.mxu3 %v1576_v28  ;;  %1035 = vmatpush.bf16.msra.mxu0 %v1653_v19 }
 0x313   :  { %957 = vmatpush.bf16.msrb.mxu2 %v1619_v59 }
 0x314   :  { %1023 = vmatpush.bf16.msra.mxu3 %v1582_v34  ;;  %1036 = vmatpush.bf16.msra.mxu0 %v1660_v23 }
 0x317   :  { %958 = vmatpush.bf16.msrb.mxu2 %v1624_v2 }
 0x318   :  { %1024 = vmatpush.bf16.msra.mxu3 %v1589_v40  ;;  %1037 = vmatpush.bf16.msra.mxu0 %v1666_v27 }
 0x31b   :  { %959 = vmatpush.bf16.msrb.mxu2 %v1634_v10 }
 0x31c   :  { %1025 = vmatpush.bf16.msra.mxu3 %v1606_v51  ;;  %1038 = vmatpush.bf16.msra.mxu0 %v1680_v35 }
 0x37c   :  { %v777_v3 = vpop.f32.mrf.mxu0 }
 0x37d   :  { %v821_v60 = vadd.f32 %v1759_v30, %v777_v3 }
 0x381   :  { %v751_v11 = vpop.f32.mrf.mxu2  ;;  %v764_v22 = vpop.f32.mrf.mxu3 }
 0x382   :  { %v781_v28 = vadd.f32 %v751_v11, %v1745_v56  ;;  %v801_v34 = vadd.f32 %v764_v22, %v143_v6 }
 0x384   :  { %v1313_v52 = vmul.f32 -1.442695, %v781_v28  ;;  %v1314_v58 = vmul.f32 -1.442695, %v801_v34  ;;  %v779_v40 = vpop.f32.mrf.mxu0 }
 0x386   :  { %1431 = vpow2.f32 %v1313_v52 }
 0x387   :  { %1433 = vpow2.f32 %v1314_v58 }
 0x389   :  { %v753_v7 = vpop.f32.mrf.mxu2  ;;  %v766_v14 = vpop.f32.mrf.mxu3 }
 0x38c   :  { %v1432_v19 = vpop.eup %1431 }
 0x38d   :  { %v1434_v51 = vpop.eup %1433  ;;  %v785_v23 = vadd.f32 1.0, %v1432_v19 }
 0x38e   :  { %v805_v27 = vadd.f32 1.0, %v1434_v51 }
 0x38f   :  { %1435 = vrcp.f32 %v785_v23  ;;  %v797_v56 = vand.u32 2147483648, %v785_v23  ;;  %v795_v24 = vand.u32 2147483647, %v785_v23  ;;  %vm791_vm5 = vweird.f32 %v785_v23 }
 0x390   :  { %1437 = vrcp.f32 %v805_v27  ;;  %v817_v17 = vand.u32 2147483648, %v805_v27  ;;  %vm811_vm9 = vweird.f32 %v805_v27  ;;  %v815_v12 = vand.u32 2147483647, %v805_v27 }
 0x391   :  { %v798_v48 = vor.u32 1.1754944e-38, %v797_v56  ;;  %vm796_vm7 = vcmp.eq.f32.partialorder %v795_v24, 8.507059e+37 }
 0x392   :  { %v818_v4 = vor.u32 1.1754944e-38, %v817_v17  ;;  %vm816_vm11 = vcmp.eq.f32.partialorder %v815_v12, 8.507059e+37  ;;  %v2009_v17 = vld [vmem:[#allocation7_spill] sm:$0xff] }
 0x395   :  { %v1436_v35 = vpop.eup %1435 }
 0x396   :  { %v1438_v44 = vpop.eup %1437  ;;  %v787_v32 = vmul.f32 %v1436_v35, %v785_v23  ;;  %vm792_vm4 = vweird.f32 %v1436_v35 }
 0x397   :  { %v807_v57 = vmul.f32 %v1438_v44, %v805_v27  ;;  %vm793_vm6 = vmor %vm791_vm5, %vm792_vm4  ;;  %vm812_vm8 = vweird.f32 %v1438_v44  ;;  %v174_v27 = vadd.f32 %v1807_v53, %v1762_v46 }
 0x398   :  { %v788_v42 = vsub.f32 1.0, %v787_v32  ;;  %vm813_vm10 = vmor %vm811_vm9, %vm812_vm8 }
 0x399   :  { %v808_v21 = vsub.f32 1.0, %v807_v57 }
 0x39a   :  { %v789_v62 = vmul.f32 %v1436_v35, %v788_v42 }
 0x39b   :  { %v809_v36 = vmul.f32 %v1438_v44, %v808_v21 }
 0x39c   :  { %v790_v1 = vadd.f32 %v1436_v35, %v789_v62 }
 0x39d   :  { %v810_v38 = vadd.f32 %v1438_v44, %v809_v36 }
 0x39e   :  { %v794_v5 = vsel %vm793_vm6, %v1436_v35, %v790_v1 }
 0x39f   :  { %v799_v45 = vsel %vm796_vm7, %v798_v48, %v794_v5  ;;  %v814_v39 = vsel %vm813_vm10, %v1438_v44, %v810_v38  ;;  %v148_v38 = vadd.f32 %v1809_v54, %v1749_v0 }
 0x3a0   :  { %v822_v43 = vmul.f32 %v821_v60, %v799_v45  ;;  %v819_v18 = vsel %vm816_vm11, %v818_v4, %v814_v39 }
 0x3a1   :  { %v825_v26 = vsub.f32 1.0, %v819_v18  ;;  %v827_v8 = vmul.f32 %v819_v18, %v1892_v20 }
 0x3a2   :  { %v823_v33 = vadd.f32 %v822_v43, %v172_v9 }
 0x3a4   :  { %1439 = vtanh.f32 %v823_v33 }
 0x3aa   :  { %v1440_v55 = vpop.eup %1439 }
 0x3ab   :  { %v826_v29 = vmul.f32 %v1440_v55, %v825_v26 }
 0x3ad   :  { %v1927_v61 = vadd.f32 %v827_v8, %v826_v29 }
 0x3af   :  { %v833_v47 = vpack.c.bf16 %v1927_v61, %v1927_v61 }
 0x3b1   :  { %842 = vmatmul.bf16.vlgmr.msra.gmra.mxu1 %v833_v47  ;;  %855 = vmatmul.bf16.vlgmr.msra.gmra.mxu2 %v833_v47 }
 0x3b2   :  { %868 = vmatmul.bf16.vlgmr.msrb.gmra.mxu3 %v833_v47  ;;  %1044 = vmatpush.bf16.msra.mxu1 %v1562_v16  ;;  %v145_v16 = vadd.f32 %v1805_v50, %v1749_v0 }
 0x3b6   :  { %1045 = vmatpush.bf16.msra.mxu1 %v1571_v25 }
 0x3ba   :  { %1046 = vmatpush.bf16.msra.mxu1 %v1579_v31 }
 0x3be   :  { %1047 = vmatpush.bf16.msra.mxu1 %v1585_v37 }
 0x3c2   :  { %1048 = vmatpush.bf16.msra.mxu1 %v1599_v49 }
 0x3c6   :  { %1049 = vmatpush.bf16.msra.mxu1 %v1619_v59 }
 0x3ca   :  { %1050 = vmatpush.bf16.msra.mxu1 %v1624_v2 }
 0x3ce   :  { %1051 = vmatpush.bf16.msra.mxu1 %v1634_v10 }
 0x42e   :  { %v843_v13 = vpop.f32.mrf.mxu1 }
 0x42f   :  { %v873_v15 = vadd.f32 %v843_v13, %v1747_v63 }
 0x431   :  { %v1315_v20 = vmul.f32 -1.442695, %v873_v15 }
 0x433   :  { %1441 = vpow2.f32 %v1315_v20 }
 0x434   :  { %v856_v25 = vpop.f32.mrf.mxu2 }
 0x435   :  { %v893_v31 = vadd.f32 %v856_v25, %v145_v16  ;;  %v869_v41 = vpop.f32.mrf.mxu3 }
 0x436   :  { %v845_v37 = vpop.f32.mrf.mxu1  ;;  %v913_v23 = vadd.f32 %v1759_v30, %v869_v41 }
 0x437   :  { %v1316_v3 = vmul.f32 -1.442695, %v893_v31 }
 0x439   :  { %v1442_v49 = vpop.eup %1441  ;;  %1443 = vpow2.f32 %v1316_v3 }
 0x43a   :  { %v877_v59 = vadd.f32 1.0, %v1442_v49 }
 0x43c   :  { %1445 = vrcp.f32 %v877_v59  ;;  %v858_v2 = vpop.f32.mrf.mxu2  ;;  %v889_v34 = vand.u32 2147483648, %v877_v59  ;;  %v887_v52 = vand.u32 2147483647, %v877_v59  ;;  %vm883_vm13 = vweird.f32 %v877_v59 }
 0x43d   :  { %v871_v6 = vpop.f32.mrf.mxu3 }
 0x43e   :  { %v890_v14 = vor.u32 1.1754944e-38, %v889_v34  ;;  %vm888_vm15 = vcmp.eq.f32.partialorder %v887_v52, 8.507059e+37 }
 0x43f   :  { %v1444_v10 = vpop.eup %1443 }
 0x440   :  { %v897_v11 = vadd.f32 1.0, %v1444_v10 }
 0x442   :  { %v1446_v22 = vpop.eup %1445  ;;  %1447 = vrcp.f32 %v897_v11  ;;  %v909_v32 = vand.u32 2147483648, %v897_v11  ;;  %v907_v42 = vand.u32 2147483647, %v897_v11  ;;  %vm903_vm2 = vweird.f32 %v897_v11 }
 0x443   :  { %v879_v63 = vmul.f32 %v1446_v22, %v877_v59  ;;  %vm884_vm12 = vweird.f32 %v1446_v22 }
 0x444   :  { %vm885_vm14 = vmor %vm883_vm13, %vm884_vm12  ;;  %v910_v62 = vor.u32 1.1754944e-38, %v909_v32  ;;  %vm908_vm4 = vcmp.eq.f32.partialorder %v907_v42, 8.507059e+37  ;;  %v1383_v32 = vld [vmem:[%s2001_s5 + $0x30] sm:$0xff]  ;;  %v2011_v42 = vld [vmem:[#allocation10_spill] sm:$0xff] }
 0x445   :  { %v880_v28 = vsub.f32 1.0, %v879_v63  ;;  %v2010_v63 = vld [vmem:[#allocation9_spill] sm:$0xff] }
 0x447   :  { %v881_v50 = vmul.f32 %v1446_v22, %v880_v28  ;;  %v177_v28 = vadd.f32 %v2010_v63, %v1762_v46 }
 0x448   :  { %v1448_v58 = vpop.eup %1447 }
 0x449   :  { %v899_v40 = vmul.f32 %v1448_v58, %v897_v11  ;;  %v882_v7 = vadd.f32 %v1446_v22, %v881_v50  ;;  %vm904_vm0 = vweird.f32 %v1448_v58 }
 0x44a   :  { %vm905_vm3 = vmor %vm903_vm2, %vm904_vm0 }
 0x44b   :  { %v900_v19 = vsub.f32 1.0, %v899_v40  ;;  %v886_v51 = vsel %vm885_vm14, %v1446_v22, %v882_v7 }
 0x44c   :  { %v891_v35 = vsel %vm888_vm15, %v890_v14, %v886_v51 }
 0x44d   :  { %v901_v44 = vmul.f32 %v1448_v58, %v900_v19  ;;  %v914_v57 = vmul.f32 %v913_v23, %v891_v35 }
 0x44f   :  { %v915_v56 = vadd.f32 %v914_v57, %v174_v27  ;;  %v902_v21 = vadd.f32 %v1448_v58, %v901_v44  ;;  %v1384_v44 = vld [vmem:[%s2001_s5 + $0x38] sm:$0xff]  ;;  %v1382_v57 = vld [vmem:[%s2001_s5 + $0x28] sm:$0xff] }
 0x450   :  { %1178 = vmatpush.bf16.msra.mxu2 %v1384_v44 }
 0x451   :  { %1449 = vtanh.f32 %v915_v56  ;;  %v906_v24 = vsel %vm905_vm3, %v1448_v58, %v902_v21  ;;  %v150_v56 = vadd.f32 %v2011_v42, %v1749_v0  ;;  %v1379_v0 = vld [vmem:[%s2001_s5 + $0x10] sm:$0xff] }
 0x452   :  { %v911_v36 = vsel %vm908_vm4, %v910_v62, %v906_v24 }
 0x453   :  { %v917_v1 = vsub.f32 1.0, %v911_v36  ;;  %v919_v53 = vmul.f32 %v911_v36, %v1927_v61  ;;  %v1381_v36 = vld [vmem:[%s2001_s5 + $0x20] sm:$0xff] }
 0x454   :  { %1179 = vmatpush.bf16.msra.mxu2 %v1383_v32 }
 0x457   :  { %v1450_v48 = vpop.eup %1449 }
 0x458   :  { %v918_v60 = vmul.f32 %v1450_v48, %v917_v1  ;;  %1180 = vmatpush.bf16.msra.mxu2 %v1382_v57  ;;  %v1380_v48 = vld [vmem:[%s2001_s5 + $0x18] sm:$0xff] }
 0x45a   :  { %v920_v5 = vadd.f32 %v919_v53, %v918_v60  ;;  %v2012_v53 = vld [vmem:[#allocation8_spill] sm:$0xff] }
 0x45c   :  { %v925_v45 = vpack.c.bf16 %v920_v5, %v920_v5  ;;  %1181 = vmatpush.bf16.msra.mxu2 %v1381_v36 }
 0x45e   :  { %934 = vmatmul.bf16.vlgmr.msrb.gmra.mxu0 %v925_v45  ;;  %947 = vmatmul.bf16.vlgmr.msrb.gmra.mxu1 %v925_v45 }
 0x45f   :  { %960 = vmatmul.bf16.vlgmr.msrb.gmra.mxu2 %v925_v45 }
 0x460   :  { %1182 = vmatpush.bf16.msra.mxu2 %v1380_v48 }
 0x464   :  { %1183 = vmatpush.bf16.msra.mxu2 %v1379_v0 }
 0x4db   :  { %v935_v9 = vpop.f32.mrf.mxu0  ;;  %v948_v43 = vpop.f32.mrf.mxu1 }
 0x4dc   :  { %v965_v12 = vadd.f32 %v935_v9, %v2009_v17  ;;  %v985_v33 = vadd.f32 %v948_v43, %v148_v38 }
 0x4de   :  { %v1317_v39 = vmul.f32 -1.442695, %v965_v12  ;;  %v1318_v4 = vmul.f32 -1.442695, %v985_v33  ;;  %v1378_v12 = vld [vmem:[%s2001_s5 + $0x8] sm:$0xff] }
 0x4df   :  { %1184 = vmatpush.bf16.msra.mxu2 %v1378_v12 }
 0x4e0   :  { %1451 = vpow2.f32 %v1317_v39  ;;  %v1377_v39 = vld [vmem:[%s2001_s5] sm:$0xff] }
 0x4e1   :  { %1453 = vpow2.f32 %v1318_v4 }
 0x4e2   :  { %v961_v18 = vpop.f32.mrf.mxu2 }
 0x4e3   :  { %v937_v26 = vpop.f32.mrf.mxu0  ;;  %v950_v55 = vpop.f32.mrf.mxu1  ;;  %v1005_v10 = vadd.f32 %v1759_v30, %v961_v18  ;;  %1185 = vmatpush.bf16.msra.mxu2 %v1377_v39 }
 0x4e6   :  { %v1452_v29 = vpop.eup %1451 }
 0x4e7   :  { %v1454_v8 = vpop.eup %1453  ;;  %v969_v61 = vadd.f32 1.0, %v1452_v29 }
 0x4e8   :  { %v989_v47 = vadd.f32 1.0, %v1454_v8 }
 0x4e9   :  { %1455 = vrcp.f32 %v969_v61  ;;  %v981_v41 = vand.u32 2147483648, %v969_v61  ;;  %v979_v3 = vand.u32 2147483647, %v969_v61  ;;  %vm975_vm6 = vweird.f32 %v969_v61 }
 0x4ea   :  { %1457 = vrcp.f32 %v989_v47  ;;  %v963_v13 = vpop.f32.mrf.mxu2  ;;  %v1001_v34 = vand.u32 2147483648, %v989_v47  ;;  %vm995_vm10 = vweird.f32 %v989_v47  ;;  %v999_v52 = vand.u32 2147483647, %v989_v47 }
 0x4eb   :  { %v982_v2 = vor.u32 1.1754944e-38, %v981_v41  ;;  %vm980_vm8 = vcmp.eq.f32.partialorder %v979_v3, 8.507059e+37 }
 0x4ec   :  { %v1002_v7 = vor.u32 1.1754944e-38, %v1001_v34  ;;  %vm1000_vm12 = vcmp.eq.f32.partialorder %v999_v52, 8.507059e+37 }
 0x4ef   :  { %v1456_v54 = vpop.eup %1455 }
 0x4f0   :  { %v1458_v15 = vpop.eup %1457  ;;  %v971_v20 = vmul.f32 %v1456_v54, %v969_v61  ;;  %vm976_vm5 = vweird.f32 %v1456_v54 }
 0x4f1   :  { %v991_v16 = vmul.f32 %v1458_v15, %v989_v47  ;;  %vm977_vm7 = vmor %vm975_vm6, %vm976_vm5  ;;  %vm996_vm9 = vweird.f32 %v1458_v15 }
 0x4f2   :  { %v972_v25 = vsub.f32 1.0, %v971_v20  ;;  %vm997_vm11 = vmor %vm995_vm10, %vm996_vm9 }
 0x4f3   :  { %v992_v31 = vsub.f32 1.0, %v991_v16 }
 0x4f4   :  { %v973_v37 = vmul.f32 %v1456_v54, %v972_v25 }
 0x4f5   :  { %v993_v49 = vmul.f32 %v1458_v15, %v992_v31  ;;  %v1471_v31 = vld [vmem:[%s2000_s4] ss:$0 sm:$0xff] }
 0x4f6   :  { %v974_v59 = vadd.f32 %v1456_v54, %v973_v37 }
 0x4f7   :  { %v994_v22 = vadd.f32 %v1458_v15, %v993_v49 }
 0x4f8   :  { %v978_v6 = vsel %vm977_vm7, %v1456_v54, %v974_v59  ;;  %v2013_v59 = vld [vmem:[#allocation11_spill] sm:$0xff] }
 0x4f9   :  { %v983_v11 = vsel %vm980_vm8, %v982_v2, %v978_v6  ;;  %v998_v40 = vsel %vm997_vm11, %v1458_v15, %v994_v22  ;;  %v179_v2 = vadd.f32 %v2013_v59, %v1762_v46  ;;  %v1390_v46 = vld [vmem:[%s2002_s6] ss:$0 sm:$0xff] }
 0x4fa   :  { %v1006_v50 = vmul.f32 %v1005_v10, %v983_v11  ;;  %v1003_v14 = vsel %vm1000_vm12, %v1002_v7, %v998_v40 }
 0x4fb   :  { %v1009_v19 = vsub.f32 1.0, %v1003_v14  ;;  %v1011_v23 = vmul.f32 %v1003_v14, %v920_v5 }
 0x4fc   :  { %v1007_v58 = vadd.f32 %v1006_v50, %v177_v28 }
 0x4fe   :  { %1459 = vtanh.f32 %v1007_v58 }
 0x504   :  { %v1460_v51 = vpop.eup %1459 }
 0x505   :  { %v1010_v30 = vmul.f32 %v1460_v51, %v1009_v19 }
 0x507   :  { %v1952_v27 = vadd.f32 %v1011_v23, %v1010_v30 }
 0x509   :  { %v1017_v35 = vpack.c.bf16 %v1952_v27, %v1952_v27 }
 0x50b   :  { %1026 = vmatmul.bf16.vlgmr.msra.gmra.mxu3 %v1017_v35  ;;  %1039 = vmatmul.bf16.vlgmr.msra.gmra.mxu0 %v1017_v35 }
 0x50c   :  { %1052 = vmatmul.bf16.vlgmr.msra.gmra.mxu1 %v1017_v35 }
 0x588   :  { %v1040_v21 = vpop.f32.mrf.mxu0 }
 0x589   :  { %v1077_v62 = vadd.f32 %v1040_v21, %v150_v56  ;;  %v1053_v24 = vpop.f32.mrf.mxu1 }
 0x58a   :  { %v1097_v41 = vadd.f32 %v1471_v31, %v1053_v24 }
 0x58b   :  { %v1320_v1 = vmul.f32 -1.442695, %v1077_v62 }
 0x58d   :  { %1461 = vpow2.f32 %v1320_v1 }
 0x58e   :  { %v1027_v60 = vpop.f32.mrf.mxu3 }
 0x58f   :  { %v1057_v5 = vadd.f32 %v1027_v60, %v2012_v53 }
 0x590   :  { %v1042_v45 = vpop.f32.mrf.mxu0 }
 0x591   :  { %v1319_v38 = vmul.f32 -1.442695, %v1057_v5  ;;  %v1055_v9 = vpop.f32.mrf.mxu1 }
 0x593   :  { %v1462_v43 = vpop.eup %1461  ;;  %1463 = vpow2.f32 %v1319_v38 }
 0x594   :  { %v1081_v17 = vadd.f32 1.0, %v1462_v43 }
 0x596   :  { %v1029_v33 = vpop.f32.mrf.mxu3  ;;  %1465 = vrcp.f32 %v1081_v17  ;;  %v1093_v6 = vand.u32 2147483648, %v1081_v17  ;;  %vm1087_vm3 = vweird.f32 %v1081_v17  ;;  %v1091_v11 = vand.u32 2147483647, %v1081_v17 }
 0x598   :  { %v1094_v28 = vor.u32 1.1754944e-38, %v1093_v6  ;;  %vm1092_vm5 = vcmp.eq.f32.partialorder %v1091_v11, 8.507059e+37 }
 0x599   :  { %v1464_v4 = vpop.eup %1463 }
 0x59a   :  { %v1061_v18 = vadd.f32 1.0, %v1464_v4 }
 0x59c   :  { %1467 = vrcp.f32 %v1061_v18  ;;  %v1466_v26 = vpop.eup %1465  ;;  %v1073_v13 = vand.u32 2147483648, %v1061_v18  ;;  %v1071_v15 = vand.u32 2147483647, %v1061_v18  ;;  %vm1067_vm14 = vweird.f32 %v1061_v18 }
 0x59d   :  { %v1083_v55 = vmul.f32 %v1466_v26, %v1081_v17  ;;  %vm1088_vm2 = vweird.f32 %v1466_v26 }
 0x59e   :  { %v1074_v25 = vor.u32 1.1754944e-38, %v1073_v13  ;;  %vm1072_vm0 = vcmp.eq.f32.partialorder %v1071_v15, 8.507059e+37  ;;  %vm1089_vm4 = vmor %vm1087_vm3, %vm1088_vm2 }
 0x59f   :  { %v1084_v61 = vsub.f32 1.0, %v1083_v55 }
 0x5a1   :  { %v1085_v20 = vmul.f32 %v1466_v26, %v1084_v61 }
 0x5a2   :  { %v1468_v29 = vpop.eup %1467 }
 0x5a3   :  { %v1063_v8 = vmul.f32 %v1468_v29, %v1061_v18  ;;  %vm1068_vm13 = vweird.f32 %v1468_v29  ;;  %v1086_v49 = vadd.f32 %v1466_v26, %v1085_v20 }
 0x5a4   :  { %vm1069_vm15 = vmor %vm1067_vm14, %vm1068_vm13 }
 0x5a5   :  { %v1064_v47 = vsub.f32 1.0, %v1063_v8  ;;  %v1090_v63 = vsel %vm1089_vm4, %v1466_v26, %v1086_v49 }
 0x5a6   :  { %v1095_v34 = vsel %vm1092_vm5, %v1094_v28, %v1090_v63 }
 0x5a7   :  { %v1065_v54 = vmul.f32 %v1468_v29, %v1064_v47  ;;  %v1101_v50 = vsub.f32 1.0, %v1095_v34  ;;  %v1103_v40 = vmul.f32 %v1095_v34, %v1952_v27 }
 0x5a9   :  { %v1066_v16 = vadd.f32 %v1468_v29, %v1065_v54 }
 0x5ab   :  { %v1070_v37 = vsel %vm1069_vm15, %v1468_v29, %v1066_v16 }
 0x5ac   :  { %v1075_v3 = vsel %vm1072_vm0, %v1074_v25, %v1070_v37 }
 0x5ad   :  { %v1098_v10 = vmul.f32 %v1097_v41, %v1075_v3 }
 0x5af   :  { %v1099_v22 = vadd.f32 %v1098_v10, %v179_v2 }
 0x5b1   :  { %1469 = vtanh.f32 %v1099_v22 }
 0x5b7   :  { %v1470_v52 = vpop.eup %1469 }
 0x5b8   :  { %v1102_v58 = vmul.f32 %v1470_v52, %v1101_v50 }
 0x5ba   :  { %v1104_v7 = vadd.f32 %v1103_v40, %v1102_v58 }
 0x5bc   :  { %v1109_v14 = vpack.c.bf16 %v1104_v7, %v1104_v7 }
 0x5be   :  { %1186 = vmatmul.bf16.vlgmr.msra.gmra.mxu2 %v1109_v14 }
 0x641   :  { %v1187_v19 = vpop.f32.mrf.mxu2 }
 0x642   :  { %v1188_v51 = vadd.f32 %v1390_v46, %v1187_v19 }
 0x644   :  { %1191 = vst.msk [vmem:[%s2003_s7] sm:$0xff] %vm74_vm1, %v1188_v51 }
 0x649   :  { %v1189_v30 = vpop.f32.mrf.mxu2 }
 0x64a   :  { %1196 = vsyncpa [#allocation5], 1 }

</bundles_post_ra>
